<compile_context>
chip_gen: v5e
topology: v5e:2x2
jax: 0.10.0
libtpu: 0.0.40
codegen_flags: <defaults>
</compile_context>

<pallas_src>
import functools
import math

import jax
import jax.numpy as jnp
from jax import lax
from jax.experimental import pallas as pl
from jax.experimental.pallas import tpu as pltpu

VMEM_SPEC = pl.BlockSpec(memory_space=pltpu.MemorySpace.VMEM)
SMEM_SPEC = pl.BlockSpec(memory_space=pltpu.MemorySpace.SMEM)


def _full_specs(n):
    return [VMEM_SPEC] * n


def _cdiv(a, b):
    return -(-a // b)


def _round_up(a, b):
    return _cdiv(a, b) * b


def _layernorm(x, w, b, eps=1e-5):
    mu = jnp.mean(x, axis=-1, keepdims=True)
    var = jnp.mean((x - mu) ** 2, axis=-1, keepdims=True)
    return (x - mu) * lax.rsqrt(var + eps) * w + b


def _vmem_budget_bytes(frac=0.7, fallback=64 * 1024 * 1024):
    """Per-generation VMEM budget (v7x: 64 MiB physical, v5e/v6e: 128 MiB)."""
    try:
        cap = pltpu.get_tpu_info().vmem_capacity_bytes
    except Exception:
        cap = fallback
    return int(cap * frac)


# ---------------------------------------------------------------------------
# Kernel 1: GCN layer (image encoder `clip_model.gnn` hot path)
#   adj @ x @ W + b  ==  adj @ (x @ W) + b  — compute xW once, then stream
#   row tiles of adj through a parallel grid.
# ---------------------------------------------------------------------------
def _dense_bias_kernel(x_ref, w_ref, b_ref, o_ref):
    o_ref[...] = jnp.dot(x_ref[...].astype(jnp.bfloat16),
                         w_ref[...].astype(jnp.bfloat16),
                         preferred_element_type=jnp.float32) + b_ref[...]


def _spmm_kernel(adj_ref, xw_ref, o_ref, *, relu):
    h = jnp.dot(adj_ref[...].astype(jnp.bfloat16),
                xw_ref[...].astype(jnp.bfloat16),
                preferred_element_type=jnp.float32)
    if relu:
        h = jnp.maximum(h, 0.0)
    o_ref[...] = h


def gcn_layer(adj, x, w, b, relu, row_tile=256):
    n = adj.shape[0]
    h_out = w.shape[1]

    # xW = x @ W + b (small, VMEM resident)
    xw = pl.pallas_call(
        _dense_bias_kernel,
        out_shape=jax.ShapeDtypeStruct((n, h_out), jnp.float32),
        in_specs=_full_specs(3),
        out_specs=VMEM_SPEC,
    )(x, w, b)
    # TODO(synk): if (N, h_out) xW itself outgrows VMEM, tile the contraction too.

    tile_r = min(row_tile, _round_up(n, 8))
    n_p = _round_up(n, tile_r)
    adj_p = adj if n_p == n else jnp.pad(adj, ((0, n_p - n), (0, 0)))

    out = pl.pallas_call(
        functools.partial(_spmm_kernel, relu=relu),
        out_shape=jax.ShapeDtypeStruct((n_p, h_out), jnp.float32),
        grid_spec=pltpu.PrefetchScalarGridSpec(
            num_scalar_prefetch=0,
            grid=(n_p // tile_r,),
            in_specs=[pl.BlockSpec((tile_r, n), lambda i: (i, 0)),
                      pl.BlockSpec((n, h_out), lambda i: (0, 0))],
            out_specs=pl.BlockSpec((tile_r, h_out), lambda i: (i, 0)),
        ),
        compiler_params=pltpu.CompilerParams(
            dimension_semantics=("parallel",)),
    )(adj_p, xw)
    return out[:n] if n_p != n else out


# ---------------------------------------------------------------------------
# Kernel 2: fused text transformer (all layers in one pallas_call)
#   grid = (n_cls_p // tile_b, n_layers); dimension_semantics ("parallel","arbitrary")
#   The output block (same block index across the layer axis) is the resident
#   activation; per-layer weights are streamed/prefetched by the BlockSpec
#   pipeline while layer l computes.
# ---------------------------------------------------------------------------
def _text_transformer_kernel(x_ref, mask_ref,
                             ln1_w, ln1_b, wqkv, bqkv, wo, bo,
                             ln2_w, ln2_b, w1, b1, w2, b2,
                             o_ref, *, n_heads):
    layer = pl.program_id(1)

    # Layer 0: seed the resident activation with the (already position-embedded)
    # prompt block.
    @pl.when(layer == 0)
    def _():
        o_ref[...] = x_ref[...]

    x = o_ref[...]                                   # (tb, L, D) f32, VMEM-resident
    tb, seq, d = x.shape
    hd = d // n_heads
    n = tb * seq
    x2 = x.reshape(n, d)                             # free (seq % 8 == 0)

    # ---- multi-head self-attention (pre-LN, causal, fused QKV) ----
    h = _layernorm(x2, ln1_w[0], ln1_b[0]).astype(jnp.bfloat16)
    qkv = jnp.dot(h, wqkv[0], preferred_element_type=jnp.float32) + bqkv[0]
    q = qkv[:, :d] * (1.0 / float(hd) ** 0.5)        # fold softmax scale into q
    k = qkv[:, d:2 * d]
    v = qkv[:, 2 * d:]

    def split_heads(t):                              # (n, d) -> (H*tb, L, hd)
        parts = [t[:, i * hd:(i + 1) * hd] for i in range(n_heads)]
        return jnp.stack(parts, axis=0).reshape(n_heads * tb, seq, hd)

    qh = split_heads(q).astype(jnp.bfloat16)
    kh = split_heads(k).astype(jnp.bfloat16)
    vh = split_heads(v).astype(jnp.bfloat16)

    s = jnp.einsum('zld,zmd->zlm', qh, kh,
                   preferred_element_type=jnp.float32)
    s = s + mask_ref[...][None]                      # causal mask added once, f32
    s = s - jnp.max(s, axis=-1, keepdims=True)
    p = jnp.exp(s)
    p = p * pl.reciprocal(jnp.sum(p, axis=-1, keepdims=True), approx=True)
    av = jnp.einsum('zlm,zmd->zld', p.astype(jnp.bfloat16), vh,
                    preferred_element_type=jnp.float32)          # (H*tb, L, hd)

    # Merge heads back to (n, D) and run ONE full-K=D output projection.
    av = av.reshape(n_heads, n, hd)                  # free leading-dim split
    av = jnp.concatenate([av[i] for i in range(n_heads)], axis=-1)   # (n, D)
    attn = jnp.dot(av.astype(jnp.bfloat16), wo[0],
                   preferred_element_type=jnp.float32) + bo[0]
    x2 = x2 + attn

    # ---- MLP with QuickGELU (CLIP) ----
    h2 = _layernorm(x2, ln2_w[0], ln2_b[0]).astype(jnp.bfloat16)
    m = jnp.dot(h2, w1[0], preferred_element_type=jnp.float32) + b1[0]
    m = m * jax.nn.sigmoid(1.702 * m)                # QuickGELU, f32 elementwise
    m = jnp.dot(m.astype(jnp.bfloat16), w2[0],
                preferred_element_type=jnp.float32) + b2[0]

    o_ref[...] = (x2 + m).reshape(tb, seq, d)


_LAYER_KEYS = ('ln1_w', 'ln1_b', 'wqkv', 'bqkv', 'wo', 'bo',
               'ln2_w', 'ln2_b', 'w1', 'b1', 'w2', 'b2')


def stack_layers(layers):
    """Stack per-layer params along a leading layer axis (done ONCE at init —
    do NOT call per forward).  Q/K/V weights are fused into one (D, 3D) matrix;
    matmul weights are stored in bf16 (halves weight DMA); all accumulation
    stays f32 inside the kernel."""
    out = {
        'ln1_w': jnp.stack([l['ln1_w'] for l in layers]),
        'ln1_b': jnp.stack([l['ln1_b'] for l in layers]),
        'wqkv': jnp.stack([jnp.concatenate([l['wq'], l['wk'], l['wv']], axis=-1)
                           for l in layers]).astype(jnp.bfloat16),
        'bqkv': jnp.stack([jnp.concatenate([l['bq'], l['bk'], l['bv']], axis=-1)
                           for l in layers]),
        'wo': jnp.stack([l['wo'] for l in layers]).astype(jnp.bfloat16),
        'bo': jnp.stack([l['bo'] for l in layers]),
        'ln2_w': jnp.stack([l['ln2_w'] for l in layers]),
        'ln2_b': jnp.stack([l['ln2_b'] for l in layers]),
        'w1': jnp.stack([l['w1'] for l in layers]).astype(jnp.bfloat16),
        'b1': jnp.stack([l['b1'] for l in layers]),
        'w2': jnp.stack([l['w2'] for l in layers]).astype(jnp.bfloat16),
        'b2': jnp.stack([l['b2'] for l in layers]),
    }
    for k in out:
        if out[k].dtype != jnp.bfloat16:
            out[k] = out[k].astype(jnp.float32)
    return out


def text_encoder(prompts, mask, stacked, n_heads):
    """prompts: (n_cls, L, D) already includes the positional embedding."""
    n_cls, seq, d = prompts.shape
    n_layers = stacked['wqkv'].shape[0]
    mlp_h = stacked['w1'].shape[-1]
    assert d % n_heads == 0, "width must be divisible by n_heads"

    # Pad seq to a multiple of 8 so (tb, L, D) <-> (tb*L, D) is a free view.
    seq_p = _round_up(seq, 8)
    if seq_p != seq:
        prompts = jnp.pad(prompts, ((0, 0), (0, seq_p - seq), (0, 0)))
        mask = jnp.pad(mask, ((0, seq_p - seq), (0, seq_p - seq)),
                       constant_values=-1e9)

    # --- explicit VMEM accounting (matters on v7x's 64 MiB) ---
    budget = _vmem_budget_bytes()
    # double-buffered per-layer stacked-weight blocks
    w_bytes = sum(math.prod(a.shape[1:]) * a.dtype.itemsize
                  for a in stacked.values())
    # double-buffered input + output activation blocks (f32) per class
    io_per_cls = 2 * 2 * seq_p * d * 4
    # rough f32 working set per class (qkv / heads / scores / mlp intermediates)
    work_per_cls = 4 * (12 * seq_p * d + 2 * seq_p * mlp_h
                        + 3 * n_heads * seq_p * seq_p)
    cap = max(1, (budget - 2 * w_bytes) // (io_per_cls + work_per_cls))

    tile_b = max(1, min(cap, n_cls))
    if n_cls > 1:
        # keep >= 2 class tiles so the "parallel" axis can use both v7x TCs
        tile_b = min(tile_b, _cdiv(n_cls, 2))
    n_tiles = _cdiv(n_cls, tile_b)
    n_cls_p = n_tiles * tile_b
    if n_cls_p != n_cls:          # pad classes instead of shrinking tile_b
        prompts = jnp.pad(prompts, ((0, n_cls_p - n_cls), (0, 0), (0, 0)))

    act_spec = pl.BlockSpec((tile_b, seq_p, d), lambda b, l: (b, 0, 0))
    mask_spec = pl.BlockSpec((seq_p, seq_p), lambda b, l: (0, 0))

    def layer_spec(arr):
        nd = arr.ndim
        return pl.BlockSpec((1,) + arr.shape[1:],
                            lambda b, l, nd=nd: (l,) + (0,) * (nd - 1))

    in_specs = ([act_spec, mask_spec]
                + [layer_spec(stacked[k]) for k in _LAYER_KEYS])

    out = pl.pallas_call(
        functools.partial(_text_transformer_kernel, n_heads=n_heads),
        out_shape=jax.ShapeDtypeStruct((n_cls_p, seq_p, d), jnp.float32),
        grid_spec=pltpu.PrefetchScalarGridSpec(
            num_scalar_prefetch=0,
            grid=(n_tiles, n_layers),
            in_specs=in_specs,
            out_specs=act_spec,
        ),
        compiler_params=pltpu.CompilerParams(
            dimension_semantics=("parallel", "arbitrary"),
            vmem_limit_bytes=int(budget)),
    )(prompts, mask, *[stacked[k] for k in _LAYER_KEYS])
    return out[:n_cls, :seq]


# ---------------------------------------------------------------------------
# Kernel 3: fused head — ln_final + text projection + L2-normalize + logits
# ---------------------------------------------------------------------------
def _clip_head_kernel(eot_ref, ln_w, ln_b, proj_ref, img_ref, scale_ref, o_ref):
    txt = _layernorm(eot_ref[...], ln_w[...], ln_b[...])
    txt = jnp.dot(txt.astype(jnp.bfloat16), proj_ref[...].astype(jnp.bfloat16),
                  preferred_element_type=jnp.float32)
    txt = txt * lax.rsqrt(jnp.sum(txt * txt, axis=-1, keepdims=True))
    img = img_ref[...]
    img = img * lax.rsqrt(jnp.sum(img * img, axis=-1, keepdims=True))
    scale = scale_ref[0, 0]                      # exp(logit_scale), SMEM scalar
    logits = lax.dot_general(img.astype(jnp.bfloat16), txt.astype(jnp.bfloat16),
                             (((1,), (1,)), ((), ())),
                             preferred_element_type=jnp.float32)
    o_ref[...] = scale * logits


def clip_head(eot_tokens, ln_w, ln_b, proj, image_features, logit_scale_exp):
    b = image_features.shape[0]
    n_cls = eot_tokens.shape[0]
    return pl.pallas_call(
        _clip_head_kernel,
        out_shape=jax.ShapeDtypeStruct((b, n_cls), jnp.float32),
        in_specs=_full_specs(5) + [SMEM_SPEC],
        out_specs=VMEM_SPEC,
    )(eot_tokens, ln_w, ln_b, proj, image_features, logit_scale_exp)


# ---------------------------------------------------------------------------
# CoOp forward (glue in plain JAX, compute in the kernels above)
# ---------------------------------------------------------------------------
def coop_forward(s_n, x, adj, params, stacked, *, n_heads):
    # ---- image encoder: 2-layer GCN, then select query nodes s_n ----
    h1 = gcn_layer(adj, x, params['gW1'], params['gb1'], relu=True)
    img_all = gcn_layer(adj, h1, params['gW2'], params['gb2'], relu=False)
    image_features = img_all[s_n]                                       # (B, E)

    # ---- prompt learner (class_token_position == 'end', unified context) ----
    # TODO(synk): 'middle'/'front' positions and class-specific ctx not implemented.
    n_cls = params['token_prefix'].shape[0]
    ctx = params['ctx']
    ctx = jnp.broadcast_to(ctx[None], (n_cls,) + ctx.shape)             # (n_cls, n_ctx, D)
    prompts = jnp.concatenate(
        [params['token_prefix'], ctx, params['token_suffix']], axis=1)  # (n_cls, L, D)
    prompts = prompts + params['pos_emb'][None]

    # ---- text encoder: single fused pallas_call over (class tiles, layers) ----
    h = text_encoder(prompts, params['causal_mask'], stacked, n_heads)
    eot_idx = jnp.argmax(params['tokenized_prompts'], axis=-1)          # EOT = max token id
    eot_tokens = h[jnp.arange(n_cls), eot_idx]                          # (n_cls, D)

    # ---- ln_final + text projection + CLIP logit head (fused) ----
    return clip_head(eot_tokens, params['ln_final_w'], params['ln_final_b'],
                     params['text_projection'], image_features,
                     jnp.exp(params['logit_scale']))


if __name__ == "__main__":
    # ---- small configuration consistent with the module ----
    n_cls, n_ctx, L, D, E = 4, 4, 16, 32, 32      # classes, ctx len, context_length, width, embed
    n_heads, mlp_h, n_layers = 2, 64, 2
    N_nodes, F_in, gnn_h = 8, 16, 32
    B = 2

    key = jax.random.PRNGKey(0)
    ks = iter(jax.random.split(key, 64))

    def nrm(shape, std=0.02):
        return std * jax.random.normal(next(ks), shape, dtype=jnp.float32)

    # PromptLearner parameter + buffers (synthetic token-embedding outputs)
    ctx_vectors = nrm((n_ctx, D))                  # learnable unified context
    token_prefix = nrm((n_cls, 1, D))              # SOT embedding
    token_suffix = nrm((n_cls, L - 1 - n_ctx, D))  # class-name + EOT + pad embeddings

    # synthetic tokenized prompts; EOT has the largest id so argmax(-1) locates it
    name_lens = [1, 2, 1, 2]
    tokenized = jnp.zeros((n_cls, L), dtype=jnp.int32).at[:, 0].set(1)
    for i, nl in enumerate(name_lens):
        tokenized = tokenized.at[i, 1:1 + n_ctx + nl].set(2 + i)
    eot_pos = jnp.array([1 + n_ctx + nl for nl in name_lens], dtype=jnp.int32)
    tokenized = tokenized.at[jnp.arange(n_cls), eot_pos].set(49407)

    # TextEncoder parameters (x @ W layout; real CLIP checkpoints need transposing)
    layers = []
    for _ in range(n_layers):
        layers.append(dict(
            ln1_w=jnp.ones((1, D)), ln1_b=jnp.zeros((1, D)),
            wq=nrm((D, D)), bq=jnp.zeros((1, D)),
            wk=nrm((D, D)), bk=jnp.zeros((1, D)),
            wv=nrm((D, D)), bv=jnp.zeros((1, D)),
            wo=nrm((D, D)), bo=jnp.zeros((1, D)),
            ln2_w=jnp.ones((1, D)), ln2_b=jnp.zeros((1, D)),
            w1=nrm((D, mlp_h)), b1=jnp.zeros((1, mlp_h)),
            w2=nrm((mlp_h, D)), b2=jnp.zeros((1, D)),
        ))
    causal_mask = jnp.where(jnp.tril(jnp.ones((L, L), dtype=bool)), 0.0, -1e9
                            ).astype(jnp.float32)

    params = dict(
        ctx=ctx_vectors,
        token_prefix=token_prefix,
        token_suffix=token_suffix,
        tokenized_prompts=tokenized,
        pos_emb=nrm((L, D), 0.01),
        causal_mask=causal_mask,
        ln_final_w=jnp.ones((1, D)),
        ln_final_b=jnp.zeros((1, D)),
        text_projection=nrm((D, E)),
        logit_scale=jnp.full((1, 1), jnp.log(1.0 / 0.07), dtype=jnp.float32),
        # image encoder (graph GCN) parameters
        gW1=nrm((F_in, gnn_h)), gb1=jnp.zeros((1, gnn_h)),
        gW2=nrm((gnn_h, E)), gb2=jnp.zeros((1, E)),
    )

    # Stack + bf16-cast transformer weights ONCE at init (not per forward call).
    stacked = stack_layers(layers)
    stacked = jax.tree_util.tree_map(jax.block_until_ready, stacked)

    # ---- inputs ----
    x = jax.random.normal(next(ks), (N_nodes, F_in), dtype=jnp.float32)
    a = jax.random.uniform(next(ks), (N_nodes, N_nodes))
    adj = ((a + a.T) > 0.8).astype(jnp.float32) + jnp.eye(N_nodes, dtype=jnp.float32)
    adj = adj / jnp.sum(adj, axis=-1, keepdims=True)   # row-normalized adjacency
    s_n = jnp.array([0, 3], dtype=jnp.int32)
    label = jnp.array([1, 2], dtype=jnp.int32)          # unused: inference only

    forward = jax.jit(functools.partial(coop_forward, n_heads=n_heads))
    logits = forward(s_n, x, adj, params, stacked)
    logits = jax.block_until_ready(logits)
    assert logits.shape == (B, n_cls) and bool(jnp.all(jnp.isfinite(logits)))
    print("KERNEL_OK")
</pallas_src>

<mosaic_0001>
module attributes {stable_mosaic.version = 11 : i64} {
  func.func @_dense_bias_kernel(%arg0: memref<8x16xf32, #tpu.memory_space<vmem>>, %arg1: memref<16x32xf32, #tpu.memory_space<vmem>>, %arg2: memref<1x32xf32, #tpu.memory_space<vmem>>, %arg3: memref<8x32xf32, #tpu.memory_space<vmem>>) attributes {dimension_semantics = [], scalar_prefetch = 0 : i64, scratch_operands = 0 : i64, tpu.core_type = #tpu.core_type<tc>} {
    %c0 = arith.constant 0 : index
    %c0_0 = arith.constant 0 : index
    %0 = vector.load %arg0[%c0, %c0_0] : memref<8x16xf32, #tpu.memory_space<vmem>>, vector<8x16xf32>
    %1 = arith.truncf %0 : vector<8x16xf32> to vector<8x16xbf16>
    %c0_1 = arith.constant 0 : index
    %c0_2 = arith.constant 0 : index
    %2 = vector.load %arg1[%c0_1, %c0_2] : memref<16x32xf32, #tpu.memory_space<vmem>>, vector<16x32xf32>
    %3 = arith.truncf %2 : vector<16x32xf32> to vector<16x32xbf16>
    %cst = arith.constant dense<0.000000e+00> : vector<8x32xf32>
    %4 = tpu.matmul %1, %3, %cst {dimension_numbers = #tpu.dot_dimension_numbers<[1], [0], [0], [1], [0, 0, 1, 1], [], []>} : vector<8x16xbf16>, vector<16x32xbf16>, vector<8x32xf32> -> vector<8x32xf32>
    %c0_3 = arith.constant 0 : index
    %c0_4 = arith.constant 0 : index
    %5 = vector.load %arg2[%c0_3, %c0_4] : memref<1x32xf32, #tpu.memory_space<vmem>>, vector<1x32xf32>
    %6 = vector.broadcast %5 : vector<1x32xf32> to vector<8x32xf32>
    %7 = arith.addf %4, %6 : vector<8x32xf32>
    %c0_5 = arith.constant 0 : index
    %c0_6 = arith.constant 0 : index
    %8 = vector.load %arg3[%c0_5, %c0_6] : memref<8x32xf32, #tpu.memory_space<vmem>>, vector<8x32xf32>
    tpu.vector_store %arg3[%c0_5, %c0_6], %7 {strides = array<i32>} : memref<8x32xf32, #tpu.memory_space<vmem>>, vector<8x32xf32>,
    return
  }
}

module attributes {stable_mosaic.version = 11 : i64} {
  func.func @_spmm_kernel(%arg0: i32, %arg1: memref<8x8xf32, #tpu.memory_space<vmem>>, %arg2: memref<8x32xf32, #tpu.memory_space<vmem>>, %arg3: memref<8x32xf32, #tpu.memory_space<vmem>>) attributes {dimension_semantics = [#tpu.dimension_semantics<parallel>], iteration_bounds = array<i64: 1>, scalar_prefetch = 0 : i64, scratch_operands = 0 : i64, tpu.core_type = #tpu.core_type<tc>, window_params = [{transform_indices = @transform_0, window_bounds = array<i64: 8, 8>}, {pipeline_mode = #tpu.pipeline_mode<synchronous>, transform_indices = @transform_1, window_bounds = array<i64: 8, 32>}, {transform_indices = @transform_2, window_bounds = array<i64: 8, 32>}]} {
    %c0 = arith.constant 0 : index
    %c0_0 = arith.constant 0 : index
    %0 = vector.load %arg1[%c0, %c0_0] : memref<8x8xf32, #tpu.memory_space<vmem>>, vector<8x8xf32>
    %1 = arith.truncf %0 : vector<8x8xf32> to vector<8x8xbf16>
    %c0_1 = arith.constant 0 : index
    %c0_2 = arith.constant 0 : index
    %2 = vector.load %arg2[%c0_1, %c0_2] : memref<8x32xf32, #tpu.memory_space<vmem>>, vector<8x32xf32>
    %3 = arith.truncf %2 : vector<8x32xf32> to vector<8x32xbf16>
    %cst = arith.constant dense<0.000000e+00> : vector<8x32xf32>
    %4 = tpu.matmul %1, %3, %cst {dimension_numbers = #tpu.dot_dimension_numbers<[1], [0], [0], [1], [0, 0, 1, 1], [], []>} : vector<8x8xbf16>, vector<8x32xbf16>, vector<8x32xf32> -> vector<8x32xf32>
    %cst_3 = arith.constant 0.000000e+00 : f32
    %5 = vector.broadcast %cst_3 : f32 to vector<8x32xf32>
    %6 = arith.maximumf %4, %5 : vector<8x32xf32>
    %c0_4 = arith.constant 0 : index
    %c0_5 = arith.constant 0 : index
    %7 = vector.load %arg3[%c0_4, %c0_5] : memref<8x32xf32, #tpu.memory_space<vmem>>, vector<8x32xf32>
    tpu.vector_store %arg3[%c0_4, %c0_5], %6 {strides = array<i32>} : memref<8x32xf32, #tpu.memory_space<vmem>>, vector<8x32xf32>,
    return
  }
  func.func @transform_0(%arg0: i32) -> (i32, i32) {
    %c0_i32 = arith.constant 0 : i32
    %c0_i32_0 = arith.constant 0 : i32
    return %arg0, %c0_i32 : i32, i32
  }
  func.func @transform_1(%arg0: i32) -> (i32, i32) {
    %c0_i32 = arith.constant 0 : i32
    %c0_i32_0 = arith.constant 0 : i32
    %c0_i32_1 = arith.constant 0 : i32
    return %c0_i32, %c0_i32_0 : i32, i32
  }
  func.func @transform_2(%arg0: i32) -> (i32, i32) {
    %c0_i32 = arith.constant 0 : i32
    %c0_i32_0 = arith.constant 0 : i32
    return %arg0, %c0_i32 : i32, i32
  }
}

module attributes {stable_mosaic.version = 11 : i64} {
  func.func @_dense_bias_kernel(%arg0: memref<8x32xf32, #tpu.memory_space<vmem>>, %arg1: memref<32x32xf32, #tpu.memory_space<vmem>>, %arg2: memref<1x32xf32, #tpu.memory_space<vmem>>, %arg3: memref<8x32xf32, #tpu.memory_space<vmem>>) attributes {dimension_semantics = [], scalar_prefetch = 0 : i64, scratch_operands = 0 : i64, tpu.core_type = #tpu.core_type<tc>} {
    %c0 = arith.constant 0 : index
    %c0_0 = arith.constant 0 : index
    %0 = vector.load %arg0[%c0, %c0_0] : memref<8x32xf32, #tpu.memory_space<vmem>>, vector<8x32xf32>
    %1 = arith.truncf %0 : vector<8x32xf32> to vector<8x32xbf16>
    %c0_1 = arith.constant 0 : index
    %c0_2 = arith.constant 0 : index
    %2 = vector.load %arg1[%c0_1, %c0_2] : memref<32x32xf32, #tpu.memory_space<vmem>>, vector<32x32xf32>
    %3 = arith.truncf %2 : vector<32x32xf32> to vector<32x32xbf16>
    %cst = arith.constant dense<0.000000e+00> : vector<8x32xf32>
    %4 = tpu.matmul %1, %3, %cst {dimension_numbers = #tpu.dot_dimension_numbers<[1], [0], [0], [1], [0, 0, 1, 1], [], []>} : vector<8x32xbf16>, vector<32x32xbf16>, vector<8x32xf32> -> vector<8x32xf32>
    %c0_3 = arith.constant 0 : index
    %c0_4 = arith.constant 0 : index
    %5 = vector.load %arg2[%c0_3, %c0_4] : memref<1x32xf32, #tpu.memory_space<vmem>>, vector<1x32xf32>
    %6 = vector.broadcast %5 : vector<1x32xf32> to vector<8x32xf32>
    %7 = arith.addf %4, %6 : vector<8x32xf32>
    %c0_5 = arith.constant 0 : index
    %c0_6 = arith.constant 0 : index
    %8 = vector.load %arg3[%c0_5, %c0_6] : memref<8x32xf32, #tpu.memory_space<vmem>>, vector<8x32xf32>
    tpu.vector_store %arg3[%c0_5, %c0_6], %7 {strides = array<i32>} : memref<8x32xf32, #tpu.memory_space<vmem>>, vector<8x32xf32>,
    return
  }
}

module attributes {stable_mosaic.version = 11 : i64} {
  func.func @_text_transformer_kernel(%arg0: i32, %arg1: i32, %arg2: memref<2x16x32xf32, #tpu.memory_space<vmem>>, %arg3: memref<16x16xf32, #tpu.memory_space<vmem>>, %arg4: memref<1x1x32xf32, #tpu.memory_space<vmem>>, %arg5: memref<1x1x32xf32, #tpu.memory_space<vmem>>, %arg6: memref<1x32x96xbf16, #tpu.memory_space<vmem>>, %arg7: memref<1x1x96xf32, #tpu.memory_space<vmem>>, %arg8: memref<1x32x32xbf16, #tpu.memory_space<vmem>>, %arg9: memref<1x1x32xf32, #tpu.memory_space<vmem>>, %arg10: memref<1x1x32xf32, #tpu.memory_space<vmem>>, %arg11: memref<1x1x32xf32, #tpu.memory_space<vmem>>, %arg12: memref<1x32x64xbf16, #tpu.memory_space<vmem>>, %arg13: memref<1x1x64xf32, #tpu.memory_space<vmem>>, %arg14: memref<1x64x32xbf16, #tpu.memory_space<vmem>>, %arg15: memref<1x1x32xf32, #tpu.memory_space<vmem>>, %arg16: memref<2x16x32xf32, #tpu.memory_space<vmem>>) attributes {dimension_semantics = [#tpu.dimension_semantics<parallel>, #tpu.dimension_semantics<arbitrary>], iteration_bounds = array<i64: 2, 2>, scalar_prefetch = 0 : i64, scratch_operands = 0 : i64, tpu.core_type = #tpu.core_type<tc>, window_params = [{transform_indices = @transform_0, window_bounds = array<i64: 2, 16, 32>}, {pipeline_mode = #tpu.pipeline_mode<synchronous>, transform_indices = @transform_1, window_bounds = array<i64: 16, 16>}, {transform_indices = @transform_2, window_bounds = array<i64: 1, 1, 32>}, {transform_indices = @transform_3, window_bounds = array<i64: 1, 1, 32>}, {transform_indices = @transform_4, window_bounds = array<i64: 1, 32, 96>}, {transform_indices = @transform_5, window_bounds = array<i64: 1, 1, 96>}, {transform_indices = @transform_6, window_bounds = array<i64: 1, 32, 32>}, {transform_indices = @transform_7, window_bounds = array<i64: 1, 1, 32>}, {transform_indices = @transform_8, window_bounds = array<i64: 1, 1, 32>}, {transform_indices = @transform_9, window_bounds = array<i64: 1, 1, 32>}, {transform_indices = @transform_10, window_bounds = array<i64: 1, 32, 64>}, {transform_indices = @transform_11, window_bounds = array<i64: 1, 1, 64>}, {transform_indices = @transform_12, window_bounds = array<i64: 1, 64, 32>}, {transform_indices = @transform_13, window_bounds = array<i64: 1, 1, 32>}, {transform_indices = @transform_14, window_bounds = array<i64: 2, 16, 32>}]} {
    %c0_i32 = arith.constant 0 : i32
    %0 = arith.cmpi eq, %arg1, %c0_i32 : i32
    %1 = arith.extui %0 : i1 to i32
    %c0_i32_0 = arith.constant 0 : i32
    %2 = arith.cmpi ne, %1, %c0_i32_0 : i32
    scf.if %2 {
      %c0_64 = arith.constant 0 : index
      %c0_65 = arith.constant 0 : index
      %c0_66 = arith.constant 0 : index
      %150 = vector.load %arg2[%c0_64, %c0_65, %c0_66] : memref<2x16x32xf32, #tpu.memory_space<vmem>>, vector<2x16x32xf32>
      %c0_67 = arith.constant 0 : index
      %c0_68 = arith.constant 0 : index
      %c0_69 = arith.constant 0 : index
      %151 = vector.load %arg16[%c0_67, %c0_68, %c0_69] : memref<2x16x32xf32, #tpu.memory_space<vmem>>, vector<2x16x32xf32>
      tpu.vector_store %arg16[%c0_67, %c0_68, %c0_69], %150 {strides = array<i32>} : memref<2x16x32xf32, #tpu.memory_space<vmem>>, vector<2x16x32xf32>,
    } else {
    }
    %c0 = arith.constant 0 : index
    %c0_1 = arith.constant 0 : index
    %c0_2 = arith.constant 0 : index
    %3 = vector.load %arg16[%c0, %c0_1, %c0_2] : memref<2x16x32xf32, #tpu.memory_space<vmem>>, vector<2x16x32xf32>
    %4 = vector.shape_cast %3 : vector<2x16x32xf32> to vector<32x32xf32>
    %c0_3 = arith.constant 0 : index
    %c0_4 = arith.constant 0 : index
    %c0_5 = arith.constant 0 : index
    %5 = vector.load %arg4[%c0_3, %c0_4, %c0_5] : memref<1x1x32xf32, #tpu.memory_space<vmem>>, vector<1x1x32xf32>
    %6 = vector.shape_cast %5 : vector<1x1x32xf32> to vector<1x32xf32>
    %c0_6 = arith.constant 0 : index
    %c0_7 = arith.constant 0 : index
    %c0_8 = arith.constant 0 : index
    %7 = vector.load %arg5[%c0_6, %c0_7, %c0_8] : memref<1x1x32xf32, #tpu.memory_space<vmem>>, vector<1x1x32xf32>
    %8 = vector.shape_cast %7 : vector<1x1x32xf32> to vector<1x32xf32>
    %cst = arith.constant dense<0.000000e+00> : vector<32xf32>
    %9 = vector.multi_reduction <add>, %4, %cst [1] : vector<32x32xf32> to vector<32xf32>
    %10 = vector.shape_cast %9 : vector<32xf32> to vector<32x1xf32>
    %cst_9 = arith.constant 3.200000e+01 : f32
    %11 = vector.broadcast %cst_9 : f32 to vector<32x1xf32>
    %12 = arith.divf %10, %11 : vector<32x1xf32>
    %13 = vector.broadcast %12 : vector<32x1xf32> to vector<32x32xf32>
    %14 = arith.subf %4, %13 : vector<32x32xf32>
    %15 = arith.mulf %14, %14 : vector<32x32xf32>
    %cst_10 = arith.constant dense<0.000000e+00> : vector<32xf32>
    %16 = vector.multi_reduction <add>, %15, %cst_10 [1] : vector<32x32xf32> to vector<32xf32>
    %17 = vector.shape_cast %16 : vector<32xf32> to vector<32x1xf32>
    %cst_11 = arith.constant 3.200000e+01 : f32
    %18 = vector.broadcast %cst_11 : f32 to vector<32x1xf32>
    %19 = arith.divf %17, %18 : vector<32x1xf32>
    %20 = vector.broadcast %12 : vector<32x1xf32> to vector<32x32xf32>
    %21 = arith.subf %4, %20 : vector<32x32xf32>
    %cst_12 = arith.constant 9.99999974E-6 : f32
    %22 = vector.broadcast %cst_12 : f32 to vector<32x1xf32>
    %23 = arith.addf %19, %22 : vector<32x1xf32>
    %24 = math.rsqrt %23 : vector<32x1xf32>
    %25 = vector.broadcast %24 : vector<32x1xf32> to vector<32x32xf32>
    %26 = arith.mulf %21, %25 : vector<32x32xf32>
    %27 = vector.broadcast %6 : vector<1x32xf32> to vector<32x32xf32>
    %28 = arith.mulf %26, %27 : vector<32x32xf32>
    %29 = vector.broadcast %8 : vector<1x32xf32> to vector<32x32xf32>
    %30 = arith.addf %28, %29 : vector<32x32xf32>
    %31 = arith.truncf %30 : vector<32x32xf32> to vector<32x32xbf16>
    %c0_13 = arith.constant 0 : index
    %c0_14 = arith.constant 0 : index
    %c0_15 = arith.constant 0 : index
    %32 = vector.load %arg6[%c0_13, %c0_14, %c0_15] : memref<1x32x96xbf16, #tpu.memory_space<vmem>>, vector<1x32x96xbf16>
    %33 = vector.shape_cast %32 : vector<1x32x96xbf16> to vector<32x96xbf16>
    %cst_16 = arith.constant dense<0.000000e+00> : vector<32x96xf32>
    %34 = tpu.matmul %31, %33, %cst_16 {dimension_numbers = #tpu.dot_dimension_numbers<[1], [0], [0], [1], [0, 0, 1, 1], [], []>} : vector<32x32xbf16>, vector<32x96xbf16>, vector<32x96xf32> -> vector<32x96xf32>
    %c0_17 = arith.constant 0 : index
    %c0_18 = arith.constant 0 : index
    %c0_19 = arith.constant 0 : index
    %35 = vector.load %arg7[%c0_17, %c0_18, %c0_19] : memref<1x1x96xf32, #tpu.memory_space<vmem>>, vector<1x1x96xf32>
    %36 = vector.shape_cast %35 : vector<1x1x96xf32> to vector<1x96xf32>
    %37 = vector.broadcast %36 : vector<1x96xf32> to vector<32x96xf32>
    %38 = arith.addf %34, %37 : vector<32x96xf32>
    %39 = vector.extract_strided_slice %38 {offsets = [0, 0], sizes = [32, 32], strides = [1, 1]} : vector<32x96xf32> to vector<32x32xf32>
    %cst_20 = arith.constant 2.500000e-01 : f32
    %40 = vector.broadcast %cst_20 : f32 to vector<32x32xf32>
    %41 = arith.mulf %39, %40 : vector<32x32xf32>
    %42 = vector.extract_strided_slice %38 {offsets = [0, 32], sizes = [32, 32], strides = [1, 1]} : vector<32x96xf32> to vector<32x32xf32>
    %43 = vector.extract_strided_slice %38 {offsets = [0, 64], sizes = [32, 32], strides = [1, 1]} : vector<32x96xf32> to vector<32x32xf32>
    %44 = vector.extract_strided_slice %41 {offsets = [0, 0], sizes = [32, 16], strides = [1, 1]} : vector<32x32xf32> to vector<32x16xf32>
    %45 = vector.extract_strided_slice %41 {offsets = [0, 16], sizes = [32, 16], strides = [1, 1]} : vector<32x32xf32> to vector<32x16xf32>
    %46 = vector.shape_cast %44 : vector<32x16xf32> to vector<1x32x16xf32>
    %47 = vector.shape_cast %45 : vector<32x16xf32> to vector<1x32x16xf32>
    %48 = tpu.concatenate %46, %47 in 0 : vector<1x32x16xf32>, vector<1x32x16xf32> -> vector<2x32x16xf32>
    %49 = vector.shape_cast %48 : vector<2x32x16xf32> to vector<4x16x16xf32>
    %50 = arith.truncf %49 : vector<4x16x16xf32> to vector<4x16x16xbf16>
    %51 = vector.extract_strided_slice %42 {offsets = [0, 0], sizes = [32, 16], strides = [1, 1]} : vector<32x32xf32> to vector<32x16xf32>
    %52 = vector.extract_strided_slice %42 {offsets = [0, 16], sizes = [32, 16], strides = [1, 1]} : vector<32x32xf32> to vector<32x16xf32>
    %53 = vector.shape_cast %51 : vector<32x16xf32> to vector<1x32x16xf32>
    %54 = vector.shape_cast %52 : vector<32x16xf32> to vector<1x32x16xf32>
    %55 = tpu.concatenate %53, %54 in 0 : vector<1x32x16xf32>, vector<1x32x16xf32> -> vector<2x32x16xf32>
    %56 = vector.shape_cast %55 : vector<2x32x16xf32> to vector<4x16x16xf32>
    %57 = arith.truncf %56 : vector<4x16x16xf32> to vector<4x16x16xbf16>
    %58 = vector.extract_strided_slice %43 {offsets = [0, 0], sizes = [32, 16], strides = [1, 1]} : vector<32x32xf32> to vector<32x16xf32>
    %59 = vector.extract_strided_slice %43 {offsets = [0, 16], sizes = [32, 16], strides = [1, 1]} : vector<32x32xf32> to vector<32x16xf32>
    %60 = vector.shape_cast %58 : vector<32x16xf32> to vector<1x32x16xf32>
    %61 = vector.shape_cast %59 : vector<32x16xf32> to vector<1x32x16xf32>
    %62 = tpu.concatenate %60, %61 in 0 : vector<1x32x16xf32>, vector<1x32x16xf32> -> vector<2x32x16xf32>
    %63 = vector.shape_cast %62 : vector<2x32x16xf32> to vector<4x16x16xf32>
    %64 = arith.truncf %63 : vector<4x16x16xf32> to vector<4x16x16xbf16>
    "tpu.trace_start"() <{level = 10 : i32, message = "zld,zmd->zlm"}> : () -> ()
    %cst_21 = arith.constant dense<0.000000e+00> : vector<4x16x16xf32>
    %65 = tpu.matmul %50, %57, %cst_21 {dimension_numbers = #tpu.dot_dimension_numbers<[2], [2], [1], [1], [0, 0, 0, 1, 1, 1], [0], [0]>} : vector<4x16x16xbf16>, vector<4x16x16xbf16>, vector<4x16x16xf32> -> vector<4x16x16xf32>
    "tpu.trace_stop"() : () -> ()
    %c0_22 = arith.constant 0 : index
    %c0_23 = arith.constant 0 : index
    %66 = vector.load %arg3[%c0_22, %c0_23] : memref<16x16xf32, #tpu.memory_space<vmem>>, vector<16x16xf32>
    %67 = vector.shape_cast %66 : vector<16x16xf32> to vector<1x16x16xf32>
    %68 = vector.broadcast %67 : vector<1x16x16xf32> to vector<4x16x16xf32>
    %69 = arith.addf %65, %68 : vector<4x16x16xf32>
    %cst_24 = arith.constant dense<0xFF800000> : vector<4x16xf32>
    %70 = vector.multi_reduction <maximumf>, %69, %cst_24 [2] : vector<4x16x16xf32> to vector<4x16xf32>
    %71 = vector.shape_cast %70 : vector<4x16xf32> to vector<4x16x1xf32>
    %72 = vector.broadcast %71 : vector<4x16x1xf32> to vector<4x16x16xf32>
    %73 = arith.subf %69, %72 : vector<4x16x16xf32>
    %74 = math.exp %73 : vector<4x16x16xf32>
    %cst_25 = arith.constant dense<0.000000e+00> : vector<4x16xf32>
    %75 = vector.multi_reduction <add>, %74, %cst_25 [2] : vector<4x16x16xf32> to vector<4x16xf32>
    %76 = vector.shape_cast %75 : vector<4x16xf32> to vector<4x16x1xf32>
    %77 = tpu.reciprocal %76 {approx = true} : vector<4x16x1xf32> -> vector<4x16x1xf32>
    %78 = vector.broadcast %77 : vector<4x16x1xf32> to vector<4x16x16xf32>
    %79 = arith.mulf %74, %78 : vector<4x16x16xf32>
    %80 = arith.truncf %79 : vector<4x16x16xf32> to vector<4x16x16xbf16>
    "tpu.trace_start"() <{level = 10 : i32, message = "zlm,zmd->zld"}> : () -> ()
    %cst_26 = arith.constant dense<0.000000e+00> : vector<4x16x16xf32>
    %81 = tpu.matmul %80, %64, %cst_26 {dimension_numbers = #tpu.dot_dimension_numbers<[2], [1], [1], [2], [0, 0, 0, 1, 1, 2], [0], [0]>} : vector<4x16x16xbf16>, vector<4x16x16xbf16>, vector<4x16x16xf32> -> vector<4x16x16xf32>
    "tpu.trace_stop"() : () -> ()
    %82 = vector.shape_cast %81 : vector<4x16x16xf32> to vector<2x32x16xf32>
    %83 = vector.extract_strided_slice %82 {offsets = [0, 0, 0], sizes = [1, 32, 16], strides = [1, 1, 1]} : vector<2x32x16xf32> to vector<1x32x16xf32>
    %84 = vector.shape_cast %83 : vector<1x32x16xf32> to vector<32x16xf32>
    %85 = vector.extract_strided_slice %82 {offsets = [1, 0, 0], sizes = [1, 32, 16], strides = [1, 1, 1]} : vector<2x32x16xf32> to vector<1x32x16xf32>
    %86 = vector.shape_cast %85 : vector<1x32x16xf32> to vector<32x16xf32>
    %87 = tpu.concatenate %84, %86 in 1 : vector<32x16xf32>, vector<32x16xf32> -> vector<32x32xf32>
    %88 = arith.truncf %87 : vector<32x32xf32> to vector<32x32xbf16>
    %c0_27 = arith.constant 0 : index
    %c0_28 = arith.constant 0 : index
    %c0_29 = arith.constant 0 : index
    %89 = vector.load %arg8[%c0_27, %c0_28, %c0_29] : memref<1x32x32xbf16, #tpu.memory_space<vmem>>, vector<1x32x32xbf16>
    %90 = vector.shape_cast %89 : vector<1x32x32xbf16> to vector<32x32xbf16>
    %cst_30 = arith.constant dense<0.000000e+00> : vector<32x32xf32>
    %91 = tpu.matmul %88, %90, %cst_30 {dimension_numbers = #tpu.dot_dimension_numbers<[1], [0], [0], [1], [0, 0, 1, 1], [], []>} : vector<32x32xbf16>, vector<32x32xbf16>, vector<32x32xf32> -> vector<32x32xf32>
    %c0_31 = arith.constant 0 : index
    %c0_32 = arith.constant 0 : index
    %c0_33 = arith.constant 0 : index
    %92 = vector.load %arg9[%c0_31, %c0_32, %c0_33] : memref<1x1x32xf32, #tpu.memory_space<vmem>>, vector<1x1x32xf32>
    %93 = vector.shape_cast %92 : vector<1x1x32xf32> to vector<1x32xf32>
    %94 = vector.broadcast %93 : vector<1x32xf32> to vector<32x32xf32>
    %95 = arith.addf %91, %94 : vector<32x32xf32>
    %96 = arith.addf %4, %95 : vector<32x32xf32>
    %c0_34 = arith.constant 0 : index
    %c0_35 = arith.constant 0 : index
    %c0_36 = arith.constant 0 : index
    %97 = vector.load %arg10[%c0_34, %c0_35, %c0_36] : memref<1x1x32xf32, #tpu.memory_space<vmem>>, vector<1x1x32xf32>
    %98 = vector.shape_cast %97 : vector<1x1x32xf32> to vector<1x32xf32>
    %c0_37 = arith.constant 0 : index
    %c0_38 = arith.constant 0 : index
    %c0_39 = arith.constant 0 : index
    %99 = vector.load %arg11[%c0_37, %c0_38, %c0_39] : memref<1x1x32xf32, #tpu.memory_space<vmem>>, vector<1x1x32xf32>
    %100 = vector.shape_cast %99 : vector<1x1x32xf32> to vector<1x32xf32>
    %cst_40 = arith.constant dense<0.000000e+00> : vector<32xf32>
    %101 = vector.multi_reduction <add>, %96, %cst_40 [1] : vector<32x32xf32> to vector<32xf32>
    %102 = vector.shape_cast %101 : vector<32xf32> to vector<32x1xf32>
    %cst_41 = arith.constant 3.200000e+01 : f32
    %103 = vector.broadcast %cst_41 : f32 to vector<32x1xf32>
    %104 = arith.divf %102, %103 : vector<32x1xf32>
    %105 = vector.broadcast %104 : vector<32x1xf32> to vector<32x32xf32>
    %106 = arith.subf %96, %105 : vector<32x32xf32>
    %107 = arith.mulf %106, %106 : vector<32x32xf32>
    %cst_42 = arith.constant dense<0.000000e+00> : vector<32xf32>
    %108 = vector.multi_reduction <add>, %107, %cst_42 [1] : vector<32x32xf32> to vector<32xf32>
    %109 = vector.shape_cast %108 : vector<32xf32> to vector<32x1xf32>
    %cst_43 = arith.constant 3.200000e+01 : f32
    %110 = vector.broadcast %cst_43 : f32 to vector<32x1xf32>
    %111 = arith.divf %109, %110 : vector<32x1xf32>
    %112 = vector.broadcast %104 : vector<32x1xf32> to vector<32x32xf32>
    %113 = arith.subf %96, %112 : vector<32x32xf32>
    %cst_44 = arith.constant 9.99999974E-6 : f32
    %114 = vector.broadcast %cst_44 : f32 to vector<32x1xf32>
    %115 = arith.addf %111, %114 : vector<32x1xf32>
    %116 = math.rsqrt %115 : vector<32x1xf32>
    %117 = vector.broadcast %116 : vector<32x1xf32> to vector<32x32xf32>
    %118 = arith.mulf %113, %117 : vector<32x32xf32>
    %119 = vector.broadcast %98 : vector<1x32xf32> to vector<32x32xf32>
    %120 = arith.mulf %118, %119 : vector<32x32xf32>
    %121 = vector.broadcast %100 : vector<1x32xf32> to vector<32x32xf32>
    %122 = arith.addf %120, %121 : vector<32x32xf32>
    %123 = arith.truncf %122 : vector<32x32xf32> to vector<32x32xbf16>
    %c0_45 = arith.constant 0 : index
    %c0_46 = arith.constant 0 : index
    %c0_47 = arith.constant 0 : index
    %124 = vector.load %arg12[%c0_45, %c0_46, %c0_47] : memref<1x32x64xbf16, #tpu.memory_space<vmem>>, vector<1x32x64xbf16>
    %125 = vector.shape_cast %124 : vector<1x32x64xbf16> to vector<32x64xbf16>
    %cst_48 = arith.constant dense<0.000000e+00> : vector<32x64xf32>
    %126 = tpu.matmul %123, %125, %cst_48 {dimension_numbers = #tpu.dot_dimension_numbers<[1], [0], [0], [1], [0, 0, 1, 1], [], []>} : vector<32x32xbf16>, vector<32x64xbf16>, vector<32x64xf32> -> vector<32x64xf32>
    %c0_49 = arith.constant 0 : index
    %c0_50 = arith.constant 0 : index
    %c0_51 = arith.constant 0 : index
    %127 = vector.load %arg13[%c0_49, %c0_50, %c0_51] : memref<1x1x64xf32, #tpu.memory_space<vmem>>, vector<1x1x64xf32>
    %128 = vector.shape_cast %127 : vector<1x1x64xf32> to vector<1x64xf32>
    %129 = vector.broadcast %128 : vector<1x64xf32> to vector<32x64xf32>
    %130 = arith.addf %126, %129 : vector<32x64xf32>
    %cst_52 = arith.constant 1.702000e+00 : f32
    %131 = vector.broadcast %cst_52 : f32 to vector<32x64xf32>
    %132 = arith.mulf %131, %130 : vector<32x64xf32>
    %133 = arith.negf %132 : vector<32x64xf32>
    %134 = math.exp %133 : vector<32x64xf32>
    %cst_53 = arith.constant 1.000000e+00 : f32
    %135 = vector.broadcast %cst_53 : f32 to vector<32x64xf32>
    %136 = arith.addf %135, %134 : vector<32x64xf32>
    %137 = arith.divf %135, %136 : vector<32x64xf32>
    %138 = arith.mulf %130, %137 : vector<32x64xf32>
    %139 = arith.truncf %138 : vector<32x64xf32> to vector<32x64xbf16>
    %c0_54 = arith.constant 0 : index
    %c0_55 = arith.constant 0 : index
    %c0_56 = arith.constant 0 : index
    %140 = vector.load %arg14[%c0_54, %c0_55, %c0_56] : memref<1x64x32xbf16, #tpu.memory_space<vmem>>, vector<1x64x32xbf16>
    %141 = vector.shape_cast %140 : vector<1x64x32xbf16> to vector<64x32xbf16>
    %cst_57 = arith.constant dense<0.000000e+00> : vector<32x32xf32>
    %142 = tpu.matmul %139, %141, %cst_57 {dimension_numbers = #tpu.dot_dimension_numbers<[1], [0], [0], [1], [0, 0, 1, 1], [], []>} : vector<32x64xbf16>, vector<64x32xbf16>, vector<32x32xf32> -> vector<32x32xf32>
    %c0_58 = arith.constant 0 : index
    %c0_59 = arith.constant 0 : index
    %c0_60 = arith.constant 0 : index
    %143 = vector.load %arg15[%c0_58, %c0_59, %c0_60] : memref<1x1x32xf32, #tpu.memory_space<vmem>>, vector<1x1x32xf32>
    %144 = vector.shape_cast %143 : vector<1x1x32xf32> to vector<1x32xf32>
    %145 = vector.broadcast %144 : vector<1x32xf32> to vector<32x32xf32>
    %146 = arith.addf %142, %145 : vector<32x32xf32>
    %147 = arith.addf %96, %146 : vector<32x32xf32>
    %148 = vector.shape_cast %147 : vector<32x32xf32> to vector<2x16x32xf32>
    %c0_61 = arith.constant 0 : index
    %c0_62 = arith.constant 0 : index
    %c0_63 = arith.constant 0 : index
    %149 = vector.load %arg16[%c0_61, %c0_62, %c0_63] : memref<2x16x32xf32, #tpu.memory_space<vmem>>, vector<2x16x32xf32>
    tpu.vector_store %arg16[%c0_61, %c0_62, %c0_63], %148 {strides = array<i32>} : memref<2x16x32xf32, #tpu.memory_space<vmem>>, vector<2x16x32xf32>,
    return
  }
  func.func @transform_0(%arg0: i32, %arg1: i32) -> (i32, i32, i32) {
    %c0_i32 = arith.constant 0 : i32
    %c0_i32_0 = arith.constant 0 : i32
    %c0_i32_1 = arith.constant 0 : i32
    return %arg0, %c0_i32, %c0_i32_0 : i32, i32, i32
  }
  func.func @transform_1(%arg0: i32, %arg1: i32) -> (i32, i32) {
    %c0_i32 = arith.constant 0 : i32
    %c0_i32_0 = arith.constant 0 : i32
    %c0_i32_1 = arith.constant 0 : i32
    return %c0_i32, %c0_i32_0 : i32, i32
  }
  func.func @transform_2(%arg0: i32, %arg1: i32) -> (i32, i32, i32) {
    %c0_i32 = arith.constant 0 : i32
    %c0_i32_0 = arith.constant 0 : i32
    %c0_i32_1 = arith.constant 0 : i32
    return %arg1, %c0_i32, %c0_i32_0 : i32, i32, i32
  }
  func.func @transform_3(%arg0: i32, %arg1: i32) -> (i32, i32, i32) {
    %c0_i32 = arith.constant 0 : i32
    %c0_i32_0 = arith.constant 0 : i32
    %c0_i32_1 = arith.constant 0 : i32
    return %arg1, %c0_i32, %c0_i32_0 : i32, i32, i32
  }
  func.func @transform_4(%arg0: i32, %arg1: i32) -> (i32, i32, i32) {
    %c0_i32 = arith.constant 0 : i32
    %c0_i32_0 = arith.constant 0 : i32
    %c0_i32_1 = arith.constant 0 : i32
    return %arg1, %c0_i32, %c0_i32_0 : i32, i32, i32
  }
  func.func @transform_5(%arg0: i32, %arg1: i32) -> (i32, i32, i32) {
    %c0_i32 = arith.constant 0 : i32
    %c0_i32_0 = arith.constant 0 : i32
    %c0_i32_1 = arith.constant 0 : i32
    return %arg1, %c0_i32, %c0_i32_0 : i32, i32, i32
  }
  func.func @transform_6(%arg0: i32, %arg1: i32) -> (i32, i32, i32) {
    %c0_i32 = arith.constant 0 : i32
    %c0_i32_0 = arith.constant 0 : i32
    %c0_i32_1 = arith.constant 0 : i32
    return %arg1, %c0_i32, %c0_i32_0 : i32, i32, i32
  }
  func.func @transform_7(%arg0: i32, %arg1: i32) -> (i32, i32, i32) {
    %c0_i32 = arith.constant 0 : i32
    %c0_i32_0 = arith.constant 0 : i32
    %c0_i32_1 = arith.constant 0 : i32
    return %arg1, %c0_i32, %c0_i32_0 : i32, i32, i32
  }
  func.func @transform_8(%arg0: i32, %arg1: i32) -> (i32, i32, i32) {
    %c0_i32 = arith.constant 0 : i32
    %c0_i32_0 = arith.constant 0 : i32
    %c0_i32_1 = arith.constant 0 : i32
    return %arg1, %c0_i32, %c0_i32_0 : i32, i32, i32
  }
  func.func @transform_9(%arg0: i32, %arg1: i32) -> (i32, i32, i32) {
    %c0_i32 = arith.constant 0 : i32
    %c0_i32_0 = arith.constant 0 : i32
    %c0_i32_1 = arith.constant 0 : i32
    return %arg1, %c0_i32, %c0_i32_0 : i32, i32, i32
  }
  func.func @transform_10(%arg0: i32, %arg1: i32) -> (i32, i32, i32) {
    %c0_i32 = arith.constant 0 : i32
    %c0_i32_0 = arith.constant 0 : i32
    %c0_i32_1 = arith.constant 0 : i32
    return %arg1, %c0_i32, %c0_i32_0 : i32, i32, i32
  }
  func.func @transform_11(%arg0: i32, %arg1: i32) -> (i32, i32, i32) {
    %c0_i32 = arith.constant 0 : i32
    %c0_i32_0 = arith.constant 0 : i32
    %c0_i32_1 = arith.constant 0 : i32
    return %arg1, %c0_i32, %c0_i32_0 : i32, i32, i32
  }
  func.func @transform_12(%arg0: i32, %arg1: i32) -> (i32, i32, i32) {
    %c0_i32 = arith.constant 0 : i32
    %c0_i32_0 = arith.constant 0 : i32
    %c0_i32_1 = arith.constant 0 : i32
    return %arg1, %c0_i32, %c0_i32_0 : i32, i32, i32
  }
  func.func @transform_13(%arg0: i32, %arg1: i32) -> (i32, i32, i32) {
    %c0_i32 = arith.constant 0 : i32
    %c0_i32_0 = arith.constant 0 : i32
    %c0_i32_1 = arith.constant 0 : i32
    return %arg1, %c0_i32, %c0_i32_0 : i32, i32, i32
  }
  func.func @transform_14(%arg0: i32, %arg1: i32) -> (i32, i32, i32) {
    %c0_i32 = arith.constant 0 : i32
    %c0_i32_0 = arith.constant 0 : i32
    %c0_i32_1 = arith.constant 0 : i32
    return %arg0, %c0_i32, %c0_i32_0 : i32, i32, i32
  }
}

module attributes {stable_mosaic.version = 11 : i64} {
  func.func @_spmm_kernel(%arg0: i32, %arg1: memref<8x8xf32, #tpu.memory_space<vmem>>, %arg2: memref<8x32xf32, #tpu.memory_space<vmem>>, %arg3: memref<8x32xf32, #tpu.memory_space<vmem>>) attributes {dimension_semantics = [#tpu.dimension_semantics<parallel>], iteration_bounds = array<i64: 1>, scalar_prefetch = 0 : i64, scratch_operands = 0 : i64, tpu.core_type = #tpu.core_type<tc>, window_params = [{transform_indices = @transform_0, window_bounds = array<i64: 8, 8>}, {pipeline_mode = #tpu.pipeline_mode<synchronous>, transform_indices = @transform_1, window_bounds = array<i64: 8, 32>}, {transform_indices = @transform_2, window_bounds = array<i64: 8, 32>}]} {
    %c0 = arith.constant 0 : index
    %c0_0 = arith.constant 0 : index
    %0 = vector.load %arg1[%c0, %c0_0] : memref<8x8xf32, #tpu.memory_space<vmem>>, vector<8x8xf32>
    %1 = arith.truncf %0 : vector<8x8xf32> to vector<8x8xbf16>
    %c0_1 = arith.constant 0 : index
    %c0_2 = arith.constant 0 : index
    %2 = vector.load %arg2[%c0_1, %c0_2] : memref<8x32xf32, #tpu.memory_space<vmem>>, vector<8x32xf32>
    %3 = arith.truncf %2 : vector<8x32xf32> to vector<8x32xbf16>
    %cst = arith.constant dense<0.000000e+00> : vector<8x32xf32>
    %4 = tpu.matmul %1, %3, %cst {dimension_numbers = #tpu.dot_dimension_numbers<[1], [0], [0], [1], [0, 0, 1, 1], [], []>} : vector<8x8xbf16>, vector<8x32xbf16>, vector<8x32xf32> -> vector<8x32xf32>
    %c0_3 = arith.constant 0 : index
    %c0_4 = arith.constant 0 : index
    %5 = vector.load %arg3[%c0_3, %c0_4] : memref<8x32xf32, #tpu.memory_space<vmem>>, vector<8x32xf32>
    tpu.vector_store %arg3[%c0_3, %c0_4], %4 {strides = array<i32>} : memref<8x32xf32, #tpu.memory_space<vmem>>, vector<8x32xf32>,
    return
  }
  func.func @transform_0(%arg0: i32) -> (i32, i32) {
    %c0_i32 = arith.constant 0 : i32
    %c0_i32_0 = arith.constant 0 : i32
    return %arg0, %c0_i32 : i32, i32
  }
  func.func @transform_1(%arg0: i32) -> (i32, i32) {
    %c0_i32 = arith.constant 0 : i32
    %c0_i32_0 = arith.constant 0 : i32
    %c0_i32_1 = arith.constant 0 : i32
    return %c0_i32, %c0_i32_0 : i32, i32
  }
  func.func @transform_2(%arg0: i32) -> (i32, i32) {
    %c0_i32 = arith.constant 0 : i32
    %c0_i32_0 = arith.constant 0 : i32
    return %arg0, %c0_i32 : i32, i32
  }
}

module attributes {stable_mosaic.version = 11 : i64} {
  func.func @_clip_head_kernel(%arg0: memref<4x32xf32, #tpu.memory_space<vmem>>, %arg1: memref<1x32xf32, #tpu.memory_space<vmem>>, %arg2: memref<1x32xf32, #tpu.memory_space<vmem>>, %arg3: memref<32x32xf32, #tpu.memory_space<vmem>>, %arg4: memref<2x32xf32, #tpu.memory_space<vmem>>, %arg5: memref<1x1xf32, #tpu.memory_space<smem>>, %arg6: memref<2x4xf32, #tpu.memory_space<vmem>>) attributes {dimension_semantics = [], scalar_prefetch = 0 : i64, scratch_operands = 0 : i64, tpu.core_type = #tpu.core_type<tc>} {
    %c0 = arith.constant 0 : index
    %c0_0 = arith.constant 0 : index
    %0 = vector.load %arg0[%c0, %c0_0] : memref<4x32xf32, #tpu.memory_space<vmem>>, vector<4x32xf32>
    %c0_1 = arith.constant 0 : index
    %c0_2 = arith.constant 0 : index
    %1 = vector.load %arg1[%c0_1, %c0_2] : memref<1x32xf32, #tpu.memory_space<vmem>>, vector<1x32xf32>
    %c0_3 = arith.constant 0 : index
    %c0_4 = arith.constant 0 : index
    %2 = vector.load %arg2[%c0_3, %c0_4] : memref<1x32xf32, #tpu.memory_space<vmem>>, vector<1x32xf32>
    %cst = arith.constant dense<0.000000e+00> : vector<4xf32>
    %3 = vector.multi_reduction <add>, %0, %cst [1] : vector<4x32xf32> to vector<4xf32>
    %4 = vector.shape_cast %3 : vector<4xf32> to vector<4x1xf32>
    %cst_5 = arith.constant 3.200000e+01 : f32
    %5 = vector.broadcast %cst_5 : f32 to vector<4x1xf32>
    %6 = arith.divf %4, %5 : vector<4x1xf32>
    %7 = vector.broadcast %6 : vector<4x1xf32> to vector<4x32xf32>
    %8 = arith.subf %0, %7 : vector<4x32xf32>
    %9 = arith.mulf %8, %8 : vector<4x32xf32>
    %cst_6 = arith.constant dense<0.000000e+00> : vector<4xf32>
    %10 = vector.multi_reduction <add>, %9, %cst_6 [1] : vector<4x32xf32> to vector<4xf32>
    %11 = vector.shape_cast %10 : vector<4xf32> to vector<4x1xf32>
    %cst_7 = arith.constant 3.200000e+01 : f32
    %12 = vector.broadcast %cst_7 : f32 to vector<4x1xf32>
    %13 = arith.divf %11, %12 : vector<4x1xf32>
    %14 = vector.broadcast %6 : vector<4x1xf32> to vector<4x32xf32>
    %15 = arith.subf %0, %14 : vector<4x32xf32>
    %cst_8 = arith.constant 9.99999974E-6 : f32
    %16 = vector.broadcast %cst_8 : f32 to vector<4x1xf32>
    %17 = arith.addf %13, %16 : vector<4x1xf32>
    %18 = math.rsqrt %17 : vector<4x1xf32>
    %19 = vector.broadcast %18 : vector<4x1xf32> to vector<4x32xf32>
    %20 = arith.mulf %15, %19 : vector<4x32xf32>
    %21 = vector.broadcast %1 : vector<1x32xf32> to vector<4x32xf32>
    %22 = arith.mulf %20, %21 : vector<4x32xf32>
    %23 = vector.broadcast %2 : vector<1x32xf32> to vector<4x32xf32>
    %24 = arith.addf %22, %23 : vector<4x32xf32>
    %25 = arith.truncf %24 : vector<4x32xf32> to vector<4x32xbf16>
    %c0_9 = arith.constant 0 : index
    %c0_10 = arith.constant 0 : index
    %26 = vector.load %arg3[%c0_9, %c0_10] : memref<32x32xf32, #tpu.memory_space<vmem>>, vector<32x32xf32>
    %27 = arith.truncf %26 : vector<32x32xf32> to vector<32x32xbf16>
    %cst_11 = arith.constant dense<0.000000e+00> : vector<4x32xf32>
    %28 = tpu.matmul %25, %27, %cst_11 {dimension_numbers = #tpu.dot_dimension_numbers<[1], [0], [0], [1], [0, 0, 1, 1], [], []>} : vector<4x32xbf16>, vector<32x32xbf16>, vector<4x32xf32> -> vector<4x32xf32>
    %29 = arith.mulf %28, %28 : vector<4x32xf32>
    %cst_12 = arith.constant dense<0.000000e+00> : vector<4xf32>
    %30 = vector.multi_reduction <add>, %29, %cst_12 [1] : vector<4x32xf32> to vector<4xf32>
    %31 = vector.shape_cast %30 : vector<4xf32> to vector<4x1xf32>
    %32 = math.rsqrt %31 : vector<4x1xf32>
    %33 = vector.broadcast %32 : vector<4x1xf32> to vector<4x32xf32>
    %34 = arith.mulf %28, %33 : vector<4x32xf32>
    %c0_13 = arith.constant 0 : index
    %c0_14 = arith.constant 0 : index
    %35 = vector.load %arg4[%c0_13, %c0_14] : memref<2x32xf32, #tpu.memory_space<vmem>>, vector<2x32xf32>
    %36 = arith.mulf %35, %35 : vector<2x32xf32>
    %cst_15 = arith.constant dense<0.000000e+00> : vector<2xf32>
    %37 = vector.multi_reduction <add>, %36, %cst_15 [1] : vector<2x32xf32> to vector<2xf32>
    %38 = vector.shape_cast %37 : vector<2xf32> to vector<2x1xf32>
    %39 = math.rsqrt %38 : vector<2x1xf32>
    %40 = vector.broadcast %39 : vector<2x1xf32> to vector<2x32xf32>
    %41 = arith.mulf %35, %40 : vector<2x32xf32>
    %c0_16 = arith.constant 0 : index
    %c0_17 = arith.constant 0 : index
    %42 = memref.load %arg5[%c0_16, %c0_17] : memref<1x1xf32, #tpu.memory_space<smem>>
    %43 = arith.truncf %41 : vector<2x32xf32> to vector<2x32xbf16>
    %44 = arith.truncf %34 : vector<4x32xf32> to vector<4x32xbf16>
    %cst_18 = arith.constant dense<0.000000e+00> : vector<2x4xf32>
    %45 = tpu.matmul %43, %44, %cst_18 {dimension_numbers = #tpu.dot_dimension_numbers<[1], [1], [0], [0], [0, 0, 1, 0], [], []>} : vector<2x32xbf16>, vector<4x32xbf16>, vector<2x4xf32> -> vector<2x4xf32>
    %46 = vector.broadcast %42 : f32 to vector<2x4xf32>
    %47 = arith.mulf %46, %45 : vector<2x4xf32>
    %c0_19 = arith.constant 0 : index
    %c0_20 = arith.constant 0 : index
    %48 = vector.load %arg6[%c0_19, %c0_20] : memref<2x4xf32, #tpu.memory_space<vmem>>, vector<2x4xf32>
    tpu.vector_store %arg6[%c0_19, %c0_20], %47 {strides = array<i32>} : memref<2x4xf32, #tpu.memory_space<vmem>>, vector<2x4xf32>,
    return
  }
}

</mosaic_0001>

<bundles_post_ra>
// kernel: coop_forward.6
= control target key start
LH: loop header
LB: loop body
LE: loop exit
PB: predicated region body
PF: predicated region fallthrough
CT: control target
= control target key end

     0   :  { %vm24_vm0 = vcmask 130048   ;;  %vm41_vm1 = vcmask 261120   ;;  %s84_s1 = inlined_call_operand.vmem [shape: f32[16,32], index: 1, kind: input, shape index: {}]   ;;  %s85_s0 = inlined_call_operand.vmem [shape: f32[8,16], index: 0, kind: input, shape index: {}]   ;;  %s86_s2 = inlined_call_operand.vmem [shape: f32[1,32], index: 2, kind: input, shape index: {}]   ;;  %s87_s3 = inlined_call_operand.vmem [shape: f32[8,32], index: 3, kind: output, shape index: {}]  }
   0x1   :  { %v17_v0 = vld [vmem:[%s84_s1] sm:$0xff]  ;;  %v18_v1 = vld [vmem:[%s84_s1 + $0x8] sm:$0xff] }
   0x2   :  { %v15_v2 = vld [vmem:[%s85_s0] sm:$0xff]  ;;  %v19_v3 = vpack.c.bf16 %v18_v1, %v17_v0 }
   0x3   :  { %v16_v4 = vpack.c.bf16 %v15_v2, %v15_v2  ;;  %v48_v5 = vld [vmem:[%s86_s2] ss:$0 sm:$0xff] }
   0x4   :  { %35 = vmatpush.bf16.msra.mxu0 %v19_v3 }
   0x7   :  { %47 = vmatmul.msk.bf16.vlgmr.msra.gmra.mxu0 %vm24_vm0, %v16_v4 }
  0x84   :  { %v37_v6 = vpop.f32.mrf.mxu0 }
  0x85   :  { %v38_v7 = vadd.f32 %v48_v5, %v37_v6 }
  0x87   :  { %42 = vst.msk [vmem:[%s87_s3] sm:$0xff] %vm41_vm1, %v38_v7 }
  0x8c   :  { %v39_v8 = vpop.f32.mrf.mxu0 }

// kernel: coop_forward.7
= control target key start
LH: loop header
LB: loop body
LE: loop exit
PB: predicated region body
PF: predicated region fallthrough
CT: control target
= control target key end

     0   :  { %vm20_vm0 = vcmask 1043456   ;;  %vm16_vm1 = vcmask 64512   ;;  %vm38_vm2 = vcmask 261120   ;;  %s69_s1 = inlined_call_operand.vmem [shape: f32[8,32], index: 1, kind: input, shape index: {}]   ;;  %s70_s0 = inlined_call_operand.vmem [shape: f32[8,8], index: 0, kind: input, shape index: {}]   ;;  %s71_s2 = inlined_call_operand.vmem [shape: f32[8,32], index: 2, kind: output, shape index: {}]  }
   0x1   :  { %v14_v0 = vld [vmem:[%s69_s1] sm:$0xff] }
   0x2   :  { %v12_v1 = vld [vmem:[%s70_s0] sm:$0xff]  ;;  %v15_v2 = vpack.c.bf16 %v14_v0, %v14_v0 }
   0x3   :  { %v13_v4 = vpack.c.bf16 %v12_v1, %v12_v1 }
   0x4   :  { %v22_v3 = vsel %vm20_vm0, %v15_v2, 0 }
   0x5   :  { %31 = vmatpush.bf16.msra.mxu0 %v22_v3 }
   0x8   :  { %44 = vmatmul.msk.bf16.vlgmr.msra.gmra.mxu0 %vm16_vm1, %v13_v4 }
  0x85   :  { %v33_v5 = vpop.f32.mrf.mxu0 }
  0x86   :  { %v37_v6 = vmax.f32 %v33_v5, 0.0 }
  0x88   :  { %39 = vst.msk [vmem:[%s71_s2] sm:$0xff] %vm38_vm2, %v37_v6 }
  0x8d   :  { %v35_v7 = vpop.f32.mrf.mxu0 }

// kernel: coop_forward.8
= control target key start
LH: loop header
LB: loop body
LE: loop exit
PB: predicated region body
PF: predicated region fallthrough
CT: control target
= control target key end

     0   :  { %vm27_vm0 = vcmask 261120   ;;  %s92_s1 = inlined_call_operand.vmem [shape: f32[32,32], index: 1, kind: input, shape index: {}]   ;;  %s93_s0 = inlined_call_operand.vmem [shape: f32[8,32], index: 0, kind: input, shape index: {}]   ;;  %s94_s2 = inlined_call_operand.vmem [shape: f32[1,32], index: 2, kind: input, shape index: {}]   ;;  %s95_s3 = inlined_call_operand.vmem [shape: f32[8,32], index: 3, kind: output, shape index: {}]  }
   0x1   :  { %v19_v0 = vld [vmem:[%s92_s1 + $0x10] sm:$0xff]  ;;  %v20_v1 = vld [vmem:[%s92_s1 + $0x18] sm:$0xff]  ;;  %v17_v2 = vld [vmem:[%s92_s1] sm:$0xff] }
   0x2   :  { %v22_v3 = vpack.c.bf16 %v20_v1, %v19_v0  ;;  %v18_v4 = vld [vmem:[%s92_s1 + $0x8] sm:$0xff]  ;;  %v15_v6 = vld [vmem:[%s93_s0] sm:$0xff] }
   0x3   :  { %v21_v5 = vpack.c.bf16 %v18_v4, %v17_v2  ;;  %v16_v7 = vpack.c.bf16 %v15_v6, %v15_v6  ;;  %v50_v8 = vld [vmem:[%s94_s2] ss:$0 sm:$0xff] }
   0x4   :  { %37 = vmatpush.bf16.msra.mxu0 %v22_v3 }
   0x8   :  { %38 = vmatpush.bf16.msra.mxu0 %v21_v5 }
   0xb   :  { %49 = vmatmul.msk.bf16.vlgmr.msra.gmra.mxu0 %vm27_vm0, %v16_v7 }
  0x88   :  { %v40_v9 = vpop.f32.mrf.mxu0 }
  0x89   :  { %v41_v10 = vadd.f32 %v50_v8, %v40_v9 }
  0x8b   :  { %44 = vst.msk [vmem:[%s95_s3] sm:$0xff] %vm27_vm0, %v41_v10 }
  0x90   :  { %v42_v11 = vpop.f32.mrf.mxu0 }

// kernel: coop_forward.9
= control target key start
LH: loop header
LB: loop body
LE: loop exit
PB: predicated region body
PF: predicated region fallthrough
CT: control target
= control target key end

     0   :  { %vm20_vm0 = vcmask 1043456   ;;  %vm16_vm1 = vcmask 64512   ;;  %vm37_vm2 = vcmask 261120   ;;  %s68_s1 = inlined_call_operand.vmem [shape: f32[8,32], index: 1, kind: input, shape index: {}]   ;;  %s69_s0 = inlined_call_operand.vmem [shape: f32[8,8], index: 0, kind: input, shape index: {}]   ;;  %s70_s2 = inlined_call_operand.vmem [shape: f32[8,32], index: 2, kind: output, shape index: {}]  }
   0x1   :  { %v14_v0 = vld [vmem:[%s68_s1] sm:$0xff] }
   0x2   :  { %v12_v1 = vld [vmem:[%s69_s0] sm:$0xff]  ;;  %v15_v2 = vpack.c.bf16 %v14_v0, %v14_v0 }
   0x3   :  { %v13_v4 = vpack.c.bf16 %v12_v1, %v12_v1 }
   0x4   :  { %v22_v3 = vsel %vm20_vm0, %v15_v2, 0 }
   0x5   :  { %31 = vmatpush.bf16.msra.mxu0 %v22_v3 }
   0x8   :  { %43 = vmatmul.msk.bf16.vlgmr.msra.gmra.mxu0 %vm16_vm1, %v13_v4 }
  0x85   :  { %v33_v5 = vpop.f32.mrf.mxu0 }
  0x86   :  { %38 = vst.msk [vmem:[%s70_s2] sm:$0xff] %vm37_vm2, %v33_v5 }
  0x8d   :  { %v35_v6 = vpop.f32.mrf.mxu0 }

// kernel: coop_forward.11
= control target key start
LH: loop header
LB: loop body
LE: loop exit
PB: predicated region body
PF: predicated region fallthrough
CT: control target
= control target key end

     0   :  { %vm29_vm0 = vcmask 257024   ;;  %s278_s0 = inlined_call_operand.vmem [shape: f32[4,32], index: 0, kind: input, shape index: {}]   ;;  %s279_s1 = inlined_call_operand.vmem [shape: f32[1,32], index: 1, kind: input, shape index: {}]   ;;  %s280_s2 = inlined_call_operand.vmem [shape: f32[1,32], index: 2, kind: input, shape index: {}]   ;;  %s281_s3 = inlined_call_operand.vmem [shape: f32[32,32], index: 3, kind: input, shape index: {}]   ;;  %s282_s4 = inlined_call_operand.vmem [shape: f32[2,32], index: 4, kind: input, shape index: {}]   ;;  %s283_s5 = inlined_call_operand.<no memory space> [shape: f32[1,1], index: 5, kind: input, shape index: {}]   ;;  %s284_s6 = inlined_call_operand.hbm [shape: f32[2,4], index: 6, kind: output, shape index: {}]  }
   0x1   :  { %v26_v0 = vld [vmem:[%s278_s0] sm:$0xf] }
   0x2   :  { %v30_v1 = vsel %vm29_vm0, %v26_v0, 0.0 }
   0x3   :  { %12 = vsyncpa [#allocation4], 0  ;;  %31 = vadd.xlane.f32.xlu0 %v30_v1  ;;  %v205_v2 = vmov 32.0   ;;  %v70_v14 = vld [vmem:[%s281_s3 + $0x10] sm:$0xff]  ;;  %v71_v15 = vld [vmem:[%s281_s3 + $0x18] sm:$0xff]  ;;  %vm74_vm5 = vcmask 261120  }
   0x4   :  { %171 = vrcp.f32 %v205_v2  ;;  %v73_v16 = vpack.c.bf16 %v71_v15, %v70_v14  ;;  %v68_v17 = vld [vmem:[%s281_s3] sm:$0xff]  ;;  %v69_v18 = vld [vmem:[%s281_s3 + $0x8] sm:$0xff]  ;;  %vm108_vm6 = vcmask 254976   ;;  %s156_s14 = sshll.u32 %s284_s6, 4  ;;  %vm147_vm13 = vcmask 25600   ;;  %s157_s14 = int_to_ptr.hbm [resolvable:$true] %s156_s14 }
   0x5   :  { %v72_v19 = vpack.c.bf16 %v69_v18, %v68_v17  ;;  %v169_v29 = vld [vmem:[%s279_s1] ss:$0 sm:$0xff] }
   0x6   :  { %84 = vmatpush.bf16.msra.mxu0 %v73_v16  ;;  %v170_v32 = vld [vmem:[%s280_s2] ss:$0 sm:$0xff] }
   0x7   :  { %v106_v38 = vld [vmem:[%s282_s4] sm:$0x3]  ;;  %s206_s4 = smov [#allocation3]  }
   0x8   :  { %v107_v40 = vmul.f32 %v106_v38, %v106_v38  ;;  %s154_s11 = sshll.u32 %s206_s4, 4  ;;  %s155_s11 = int_to_ptr.vmem [resolvable:$true] %s154_s11 }
   0xa   :  { %v172_v3 = vpop.eup %171  ;;  %85 = vmatpush.bf16.msra.mxu0 %v72_v19  ;;  %v109_v42 = vsel %vm108_vm6, %v107_v40, 0.0 }
   0xb   :  { %v34_v4 = vmul.f32 32.0, %v172_v3  ;;  %vm38_vm1 = vweird.f32 %v172_v3 }
   0xd   :  { %v35_v5 = vsub.f32 1.0, %v34_v4 }
   0xf   :  { %v36_v6 = vmul.f32 %v172_v3, %v35_v5 }
  0x11   :  { %v37_v7 = vadd.f32 %v172_v3, %v36_v6 }
  0x13   :  { %v39_v8 = vsel %vm38_vm1, %v172_v3, %v37_v7 }
  0x76   :  { %v32_v9 = vpop.xlane.xlu0 %31 }
  0x77   :  { %v40_v10 = vmul.f32 %v39_v8, %v32_v9 }
  0x79   :  { %v41_v11 = vsub.f32 %v26_v0, %v40_v10  ;;  %v145_v0 = vstv %s283_s5 }
  0x7b   :  { %v42_v12 = vmul.f32 %v41_v11, %v41_v11 }
  0x7d   :  { %v43_v13 = vsel %vm29_vm0, %v42_v12, 0.0 }
  0x7e   :  { %44 = vadd.xlane.f32.xlu0 %v43_v13 }
  0xf1   :  { %v45_v20 = vpop.xlane.xlu0 %44 }
  0xf2   :  { %v46_v21 = vmul.f32 %v45_v20, %v39_v8 }
  0xf4   :  { %v47_v22 = vadd.f32 1e-05, %v46_v21 }
  0xf6   :  { %173 = vrsqrt.f32 %v47_v22  ;;  %vm54_vm3 = vweird.f32 %v47_v22 }
  0xfc   :  { %v174_v23 = vpop.eup %173 }
  0xfd   :  { %v49_v24 = vmul.f32 %v174_v23, %v47_v22  ;;  %vm55_vm2 = vweird.f32 %v174_v23 }
  0xfe   :  { %vm56_vm4 = vmor %vm54_vm3, %vm55_vm2 }
  0xff   :  { %v50_v25 = vmul.f32 %v174_v23, %v49_v24 }
 0x101   :  { %v51_v26 = vmul.f32 0.5, %v50_v25 }
 0x103   :  { %v52_v27 = vsub.f32 1.5, %v51_v26 }
 0x105   :  { %v53_v28 = vmul.f32 %v174_v23, %v52_v27 }
 0x107   :  { %v57_v30 = vsel %vm56_vm4, %v174_v23, %v53_v28 }
 0x108   :  { %v58_v31 = vmul.f32 %v57_v30, %v41_v11 }
 0x10a   :  { %v62_v33 = vmul.f32 %v169_v29, %v58_v31 }
 0x10c   :  { %v66_v34 = vadd.f32 %v170_v32, %v62_v33 }
 0x10e   :  { %v67_v35 = vpack.c.bf16 %v66_v34, %v66_v34 }
 0x110   :  { %165 = vmatmul.msk.bf16.vlgmr.msra.gmra.mxu0 %vm74_vm5, %v67_v35 }
 0x18d   :  { %v87_v36 = vpop.f32.mrf.mxu0 }
 0x18e   :  { %v91_v37 = vmul.f32 %v87_v36, %v87_v36 }
 0x190   :  { %v92_v39 = vsel %vm29_vm0, %v91_v37, 0.0 }
 0x191   :  { %93 = vadd.xlane.f32.xlu1 %v92_v39 }
 0x195   :  { %v89_v41 = vpop.f32.mrf.mxu0 }
 0x199   :  { %110 = vadd.xlane.f32.xlu1 %v109_v42 }
 0x204   :  { %v94_v43 = vpop.xlane.xlu1 %93 }
 0x205   :  { %175 = vrsqrt.f32 %v94_v43  ;;  %vm101_vm8 = vweird.f32 %v94_v43 }
 0x20b   :  { %v176_v44 = vpop.eup %175 }
 0x20c   :  { %v96_v45 = vmul.f32 %v176_v44, %v94_v43  ;;  %v111_v46 = vpop.xlane.xlu1 %110  ;;  %vm102_vm7 = vweird.f32 %v176_v44 }
 0x20d   :  { %177 = vrsqrt.f32 %v111_v46  ;;  %vm103_vm9 = vmor %vm101_vm8, %vm102_vm7  ;;  %vm118_vm11 = vweird.f32 %v111_v46 }
 0x20e   :  { %v97_v47 = vmul.f32 %v176_v44, %v96_v45 }
 0x210   :  { %v98_v48 = vmul.f32 0.5, %v97_v47 }
 0x212   :  { %v99_v49 = vsub.f32 1.5, %v98_v48 }
 0x213   :  { %v178_v50 = vpop.eup %177 }
 0x214   :  { %v113_v51 = vmul.f32 %v178_v50, %v111_v46  ;;  %v100_v52 = vmul.f32 %v176_v44, %v99_v49  ;;  %vm119_vm10 = vweird.f32 %v178_v50 }
 0x215   :  { %vm120_vm12 = vmor %vm118_vm11, %vm119_vm10 }
 0x216   :  { %v114_v53 = vmul.f32 %v178_v50, %v113_v51  ;;  %v104_v54 = vsel %vm103_vm9, %v176_v44, %v100_v52 }
 0x217   :  { %v105_v55 = vmul.f32 %v104_v54, %v87_v36 }
 0x218   :  { %v115_v56 = vmul.f32 0.5, %v114_v53 }
 0x219   :  { %v125_v57 = vpack.c.bf16 %v105_v55, %v105_v55 }
 0x21a   :  { %v116_v58 = vsub.f32 1.5, %v115_v56 }
 0x21b   :  { %v130_v59 = vsel %vm74_vm5, %v125_v57, 0 }
 0x21c   :  { %v117_v60 = vmul.f32 %v178_v50, %v116_v58  ;;  %139 = vmatpush.bf16.xpose.msra.mxu1 %v130_v59 }
 0x21e   :  { %v121_v61 = vsel %vm120_vm12, %v178_v50, %v117_v60 }
 0x21f   :  { %v122_v62 = vmul.f32 %v121_v61, %v106_v38 }
 0x221   :  { %v124_v63 = vpack.c.bf16 %v122_v62, %v122_v62 }
 0x223   :  { %166 = vmatmul.msk.bf16.vlgmr.msra.gmra.mxu1 %vm74_vm5, %v124_v63 }
 0x2a0   :  { %v141_v1 = vpop.f32.mrf.mxu1 }
 0x2a1   :  { %v146_v2 = vmul.f32 %v145_v0, %v141_v1 }
 0x2a3   :  { %148 = vst.msk [vmem:[#allocation3] sm:$0x3] %vm147_vm13, %v146_v2 }
 0x2a4   :  { %159 = dma.vmem_to_hbm [thread:$0]  %s155_s11, 32, %s157_s14, [#allocation4]  }
 0x2a8   :  { %v143_v3 = vpop.f32.mrf.mxu1 }
 0x2a9   :  { %203 = dma.done.wait [#allocation4], 32  }
 0x2aa   :  { %204 = vsyncadd [#allocation4], 4294967264 }
 0x2ab   :  { %164 = vsyncpa [#allocation4], 1 }

// kernel: coop_forward.10
= control target key start
LH: loop header
LB: loop body
LE: loop exit
PB: predicated region body
PF: predicated region fallthrough
CT: control target
= control target key end

     0   :  { %s2173_s29 = smov 0   ;;  %s2175_s30 = smov 0   ;;  %s2539_s0 = inlined_call_operand.vmem [shape: f32[4,16,32], index: 0, kind: input, shape index: {}]   ;;  %s2540_s1 = inlined_call_operand.vmem [shape: f32[16,16], index: 1, kind: input, shape index: {}]   ;;  %s2541_s2 = inlined_call_operand.vmem [shape: f32[2,1,32], index: 2, kind: input, shape index: {}]   ;;  %s2542_s3 = inlined_call_operand.vmem [shape: f32[2,1,32], index: 3, kind: input, shape index: {}]   ;;  %s2543_s4 = inlined_call_operand.vmem [shape: bf16[2,32,96], index: 4, kind: input, shape index: {}]   ;;  %s2544_s5 = inlined_call_operand.vmem [shape: f32[2,1,96], index: 5, kind: input, shape index: {}]   ;;  %s2545_s6 = inlined_call_operand.vmem [shape: bf16[2,32,32], index: 6, kind: input, shape index: {}]   ;;  %s2546_s7 = inlined_call_operand.vmem [shape: f32[2,1,32], index: 7, kind: input, shape index: {}]   ;;  %s2547_s8 = inlined_call_operand.vmem [shape: f32[2,1,32], index: 8, kind: input, shape index: {}]   ;;  %s2548_s9 = inlined_call_operand.vmem [shape: f32[2,1,32], index: 9, kind: input, shape index: {}]   ;;  %s2549_s10 = inlined_call_operand.vmem [shape: bf16[2,32,64], index: 10, kind: input, shape index: {}]   ;;  %s2550_s11 = inlined_call_operand.vmem [shape: f32[2,1,64], index: 11, kind: input, shape index: {}]   ;;  %s2551_s12 = inlined_call_operand.vmem [shape: bf16[2,64,32], index: 12, kind: input, shape index: {}]   ;;  %s2552_s13 = inlined_call_operand.vmem [shape: f32[2,1,32], index: 13, kind: input, shape index: {}]   ;;  %s2553_s14 = inlined_call_operand.vmem [shape: f32[4,16,32], index: 14, kind: output, shape index: {}]  }
   0x1   :  { %2559 = sst [smem:[#allocation8_spill]] %s2539_s0  ;;  %s2177_s15 = smov 0  }
   0x2   :  { %2560 = sst [smem:[#allocation9_spill]] %s2540_s1  ;;  %s2179_s16 = smov 0  }
   0x3   :  { %2561 = sst [smem:[#allocation10_spill]] %s2542_s3  ;;  %s2181_s17 = smov 0  }
   0x4   :  { %2562 = sst [smem:[#allocation11_spill]] %s2543_s4 }
   0x5   :  { %2563 = sst [smem:[#allocation12_spill]] %s2545_s6 }
   0x6   :  { %2564 = sst [smem:[#allocation13_spill]] %s2553_s14 }
   0x7 LB: > { %2565 = sst [smem:[#allocation2_spill]] %s2075_s29  ;;  %s33_s18 = sadd.s32 1, %s2083_s15  ;;  %s2091_s17 = sphi %s2181_s17, %s24_s17   ;;  %s2087_s16 = sphi %s2179_s16, %s2590_s16   ;;  %s2083_s15 = sphi %s2177_s15, %s2589_s15   ;;  %s2079_s30 = sphi %s2175_s30, %s2588_s30   ;;  %s2075_s29 = sphi %s2173_s29, %s2587_s29  }
   0x8   : > { %2566 = sst [smem:[#allocation3_spill]] %s2083_s15  ;;  %s36_s19 = sadd.s32 1, %s2087_s16 }
   0x9   : > { %2567 = sst [smem:[#allocation4_spill]] %s2087_s16  ;;  %p34_p0 = scmp.ge.s32.totalorder %s33_s18, 2 }
   0xa   : > { %2568 = sst [smem:[#allocation5_spill]] %s2091_s17  ;;  %p1808_p1 = scmp.ge.s32.totalorder %s2091_s17, 1 }
   0xb   : > { %p530_p2 = scmp.lt.s32.totalorder %s2091_s17, 5  ;;  %s2592_s18 = smov (%p34_p0, %s33_s18), 0 }
   0xc   : > { %2569 = sst [smem:[#allocation6_spill]] %s2592_s18  ;;  %s2594_s19 = smov (!%p34_p0, %s36_s19), %s2087_s16 }
   0xd   : > { %p531_p3 = pnand %p1808_p1, %p530_p2  ;;  %p38_p4 = scmp.ge.s32.totalorder %s2594_s19, 2 }
   0xe   : > { %s1809_s20 = sshll.u32 (!%p531_p3), %s2079_s30, 1  ;;  %p629_p5 = scmp.lt.s32.totalorder (!%p531_p3), %s2075_s29, 1 }
   0xf   : > { %s2596_s19 = smov (%p38_p4, %s2594_s19), 0  ;;  %534 = sbr.rel (%p531_p3) target bundleno = 2086 (0x826), region = 76 }
  0x10   : > { %2570 = sst [smem:[#allocation7_spill]] %s2596_s19  ;;  %p623_p6 = scmp.lt.s32.totalorder (!%p531_p3), %s1809_s20, 3 }
  0x11   : > { %s2572_s0 = sld [smem:[#allocation8_spill]] (!%p531_p3) }
  0x12   : > { %s2573_s4 = sld [smem:[#allocation11_spill]] (!%p531_p3) }
  0x13   : > { %s2574_s6 = sld [smem:[#allocation12_spill]] (!%p531_p3) }
  0x14   : > { %s2207_s21 = scalar_select %p629_p5, %s2075_s29, 1 }
  0x15   : > { %s2598_s20 = smov (!%p623_p6, %s1809_s20), 3 }
  0x16   : > { %s1886_s28 = sshll.u32 %s2598_s20, 4  ;;  %s1887_s30 = sshll.u32 %s2207_s21, 4 }
  0x17   : > { %s627_s16 = scalar_lea.vmem %s2572_s0, %s1886_s28  ;;  %s2250_s29 = scalar_lea.vmem %s2549_s10, %s1887_s30 }
  0x18   : > { %s2224_s1 = scalar_lea.vmem %s2573_s4, %s1887_s30  ;;  %s664_s22 = scalar_lea.vmem %s2550_s11, %s2207_s21 }
  0x19   : > { %s2233_s25 = scalar_lea.vmem %s2574_s6, %s1887_s30  ;;  %s1890_s6 = sshll.u32 %s2207_s21, 5 }
  0x1a   : > { %s2260_s27 = scalar_lea.vmem %s2551_s12, %s1890_s6  ;;  %s672_s15 = scalar_lea.vmem %s2552_s13, %s2207_s21 }
  0x1b   : > { %s2575_s0 = sld [smem:[#allocation13_spill]] }
  0x1c   : > { %s2576_s30 = sld [smem:[#allocation2_spill]] }
  0x21   : > { %s2269_s3 = scalar_lea.vmem %s2575_s0, %s1886_s28 }
  0x22   : > { %p1823_p7 = scmp.ne.s32.totalorder %s2576_s30, 0 }
  0x24   : > { %684 = sbr.rel (%p1823_p7) target bundleno = 46 (0x2e), region = 80 }
  0x29   : > { %v685_v0 = vld [vmem:[%s627_s16] sm:$0xff]  ;;  %vm689_vm0 = vcmask 261120   ;;  %v686_v1 = vld [vmem:[%s627_s16 + $0x8] sm:$0xff]  ;;  %v687_v2 = vld [vmem:[%s627_s16 + $0x10] sm:$0xff] }
  0x2a   : > { %690 = vst.msk [vmem:[%s2269_s3] sm:$0xff] %vm689_vm0, %v685_v0  ;;  %v688_v3 = vld [vmem:[%s627_s16 + $0x18] sm:$0xff] }
  0x2b   : > { %691 = vst.msk [vmem:[%s2269_s3 + $0x8] sm:$0xff] %vm689_vm0, %v686_v1 }
  0x2c   : > { %692 = vst.msk [vmem:[%s2269_s3 + $0x10] sm:$0xff] %vm689_vm0, %v687_v2 }
  0x2d   : > { %693 = vst.msk [vmem:[%s2269_s3 + $0x18] sm:$0xff] %vm689_vm0, %v688_v3 }
  0x2e PF: > { %vm700_vm1 = vcmask 261120   ;;  %v2093_v12 = vmov 32.0   ;;  %v1893_v39 = vld [vmem:[%s2224_s1 + $0x8] sm:$0xff]  ;;  %v1892_v44 = vld [vmem:[%s2224_s1] sm:$0xff]  ;;  %s2577_s4 = scalar_lea.vmem %s2541_s2, %s2207_s21  ;;  %s2578_s28 = sld [smem:[#allocation10_spill]]  ;;  %vm923_vm15 = vcmask 130048  }
  0x2f   : > { %1987 = vrcp.f32 %v2093_v12  ;;  %844 = vmatpush.bf16.msra.mxu0 %v1893_v39  ;;  %1902 = vmatpush.bf16.msra.mxu1 %v1893_v39  ;;  %s2580_s20 = scalar_lea.vmem %s2544_s5, %s2207_s21  ;;  %s2094_s26 = smov 112  }
  0x30   : > { %s2095_s18 = smov 96   ;;  %s2581_s30 = sld [smem:[#allocation9_spill]] }
  0x31   : > { %v2280_v5 = vld [vmem:[%s2269_s3] sm:$0xff]  ;;  %s2096_s6 = smov 64   ;;  %s2097_s16 = smov 16  }
  0x32   : > { %v701_v7 = vsel %vm700_vm1, %v2280_v5, 0.0  ;;  %v2290_v9 = vld [vmem:[%s2269_s3 + $0x8] sm:$0xff]  ;;  %s2584_s23 = scalar_lea.vmem %s2547_s8, %s2207_s21 }
  0x33   : > { %v2277_v4 = vld [vmem:[%s2269_s3 + $0x10] sm:$0xff]  ;;  %702 = vadd.xlane.f32.xlu0 %v701_v7  ;;  %v704_v11 = vsel %vm700_vm1, %v2290_v9, 0.0  ;;  %845 = vmatpush.bf16.msra.mxu0 %v1892_v44 }
  0x34   : > { %v707_v6 = vsel %vm700_vm1, %v2277_v4, 0.0  ;;  %v2287_v8 = vld [vmem:[%s2269_s3 + $0x18] sm:$0xff]  ;;  %1903 = vmatpush.bf16.msra.mxu1 %v1892_v44  ;;  %s2579_s14 = scalar_lea.vmem %s2578_s28, %s2207_s21 }
  0x35   : > { %708 = vadd.xlane.f32.xlu1 %v707_v6  ;;  %v710_v10 = vsel %vm700_vm1, %v2287_v8, 0.0  ;;  %v1988_v13 = vpop.eup %1987 }
  0x36   : > { %v714_v14 = vmul.f32 32.0, %v1988_v13  ;;  %vm718_vm2 = vweird.f32 %v1988_v13  ;;  %s2582_s0 = smov %s2581_s30 }
  0x38   : > { %v715_v15 = vsub.f32 1.0, %v714_v14 }
  0x3a   : > { %v716_v16 = vmul.f32 %v1988_v13, %v715_v15 }
  0x3b   : > { %705 = vadd.xlane.f32.xlu0 %v704_v11 }
  0x3c   : > { %v717_v17 = vadd.f32 %v1988_v13, %v716_v16 }
  0x3d   : > { %711 = vadd.xlane.f32.xlu1 %v710_v10 }
  0x3e   : > { %v2296_v18 = vsel %vm718_vm2, %v1988_v13, %v717_v17 }
  0xa6   : > { %v703_v20 = vpop.xlane.xlu0 %702 }
  0xa7   : > { %v720_v22 = vmul.f32 %v2296_v18, %v703_v20 }
  0xa8   : > { %v709_v19 = vpop.xlane.xlu1 %708 }
  0xa9   : > { %v722_v21 = vmul.f32 %v2296_v18, %v709_v19  ;;  %v2304_v24 = vsub.f32 %v2280_v5, %v720_v22  ;;  %v1979_v19 = vld [vmem:[%s2577_s4] ss:$0 sm:$0xff] }
  0xab   : > { %v2301_v23 = vsub.f32 %v2277_v4, %v722_v21  ;;  %v728_v26 = vmul.f32 %v2304_v24, %v2304_v24 }
  0xad   : > { %v730_v25 = vmul.f32 %v2301_v23, %v2301_v23  ;;  %v732_v28 = vsel %vm700_vm1, %v728_v26, 0.0 }
  0xae   : > { %733 = vadd.xlane.f32.xlu2 %v732_v28  ;;  %v706_v30 = vpop.xlane.xlu0 %705 }
  0xaf   : > { %v738_v27 = vsel %vm700_vm1, %v730_v25, 0.0  ;;  %v721_v32 = vmul.f32 %v2296_v18, %v706_v30 }
  0xb0   : > { %v712_v29 = vpop.xlane.xlu1 %711  ;;  %739 = vadd.xlane.f32.xlu0 %v738_v27 }
  0xb1   : > { %v723_v31 = vmul.f32 %v2296_v18, %v712_v29  ;;  %v2318_v34 = vsub.f32 %v2290_v9, %v721_v32 }
  0xb3   : > { %v2315_v33 = vsub.f32 %v2287_v8, %v723_v31  ;;  %v729_v36 = vmul.f32 %v2318_v34, %v2318_v34 }
  0xb5   : > { %v731_v35 = vmul.f32 %v2315_v33, %v2315_v33  ;;  %v735_v38 = vsel %vm700_vm1, %v729_v36, 0.0 }
  0xb6   : > { %736 = vadd.xlane.f32.xlu2 %v735_v38 }
  0xb7   : > { %v741_v37 = vsel %vm700_vm1, %v731_v35, 0.0 }
  0xb8   : > { %742 = vadd.xlane.f32.xlu1 %v741_v37 }
 0x121   : > { %v734_v40 = vpop.xlane.xlu2 %733 }
 0x122   : > { %v744_v42 = vmul.f32 %v734_v40, %v2296_v18 }
 0x123   : > { %v740_v41 = vpop.xlane.xlu0 %739 }
 0x124   : > { %v746_v43 = vmul.f32 %v740_v41, %v2296_v18  ;;  %v748_v45 = vadd.f32 1e-05, %v744_v42 }
 0x126   : > { %v750_v46 = vadd.f32 1e-05, %v746_v43  ;;  %1989 = vrsqrt.f32 %v748_v45  ;;  %vm758_vm7 = vweird.f32 %v748_v45 }
 0x128   : > { %1991 = vrsqrt.f32 %v750_v46  ;;  %vm778_vm3 = vweird.f32 %v750_v46 }
 0x129   : > { %v737_v48 = vpop.xlane.xlu2 %736 }
 0x12a   : > { %v745_v50 = vmul.f32 %v737_v48, %v2296_v18 }
 0x12b   : > { %v743_v47 = vpop.xlane.xlu1 %742 }
 0x12c   : > { %v747_v49 = vmul.f32 %v743_v47, %v2296_v18  ;;  %v1990_v51 = vpop.eup %1989  ;;  %v749_v53 = vadd.f32 1e-05, %v745_v50 }
 0x12d   : > { %v753_v55 = vmul.f32 %v1990_v51, %v748_v45  ;;  %vm759_vm5 = vweird.f32 %v1990_v51 }
 0x12e   : > { %v751_v52 = vadd.f32 1e-05, %v747_v49  ;;  %v1992_v54 = vpop.eup %1991  ;;  %vm760_vm8 = vmor %vm758_vm7, %vm759_vm5  ;;  %vm768_vm13 = vweird.f32 %v749_v53 }
 0x12f   : > { %v773_v56 = vmul.f32 %v1992_v54, %v750_v46  ;;  %v754_v57 = vmul.f32 %v1990_v51, %v753_v55  ;;  %vm779_vm4 = vweird.f32 %v1992_v54 }
 0x130   : > { %1993 = vrsqrt.f32 %v751_v52  ;;  %vm780_vm6 = vmor %vm778_vm3, %vm779_vm4  ;;  %vm788_vm9 = vweird.f32 %v751_v52 }
 0x131   : > { %1995 = vrsqrt.f32 %v749_v53  ;;  %v774_v58 = vmul.f32 %v1992_v54, %v773_v56  ;;  %v755_v59 = vmul.f32 0.5, %v754_v57 }
 0x133   : > { %v775_v60 = vmul.f32 0.5, %v774_v58  ;;  %v756_v61 = vsub.f32 1.5, %v755_v59 }
 0x135   : > { %v776_v63 = vsub.f32 1.5, %v775_v60  ;;  %v757_v2 = vmul.f32 %v1990_v51, %v756_v61 }
 0x136   : > { %v1994_v62 = vpop.eup %1993 }
 0x137   : > { %v1996_v0 = vpop.eup %1995  ;;  %v783_v1 = vmul.f32 %v1994_v62, %v751_v52  ;;  %v777_v3 = vmul.f32 %v1992_v54, %v776_v63  ;;  %vm789_vm10 = vweird.f32 %v1994_v62  ;;  %v761_v13 = vsel %vm760_vm8, %v1990_v51, %v757_v2 }
 0x138   : > { %v763_v6 = vmul.f32 %v1996_v0, %v749_v53  ;;  %vm790_vm11 = vmor %vm788_vm9, %vm789_vm10  ;;  %vm769_vm12 = vweird.f32 %v1996_v0  ;;  %v792_v20 = vmul.f32 %v761_v13, %v2304_v24 }
 0x139   : > { %v784_v7 = vmul.f32 %v1994_v62, %v783_v1  ;;  %v781_v11 = vsel %vm780_vm6, %v1992_v54, %v777_v3  ;;  %vm770_vm14 = vmor %vm768_vm13, %vm769_vm12 }
 0x13a   : > { %v764_v10 = vmul.f32 %v1996_v0, %v763_v6  ;;  %v794_v16 = vmul.f32 %v781_v11, %v2301_v23  ;;  %v1980_v23 = vld [vmem:[%s2579_s14] ss:$0 sm:$0xff]  ;;  %v799_v30 = vmul.f32 %v1979_v19, %v792_v20  ;;  %s2583_s14 = scalar_lea.vmem %s2546_s7, %s2207_s21 }
 0x13b   : > { %v785_v12 = vmul.f32 0.5, %v784_v7 }
 0x13c   : > { %v765_v14 = vmul.f32 0.5, %v764_v10  ;;  %v801_v28 = vmul.f32 %v1979_v19, %v794_v16  ;;  %v806_v36 = vadd.f32 %v1980_v23, %v799_v30 }
 0x13d   : > { %v786_v15 = vsub.f32 1.5, %v785_v12 }
 0x13e   : > { %v766_v17 = vsub.f32 1.5, %v765_v14  ;;  %v808_v32 = vadd.f32 %v1980_v23, %v801_v28 }
 0x13f   : > { %v787_v21 = vmul.f32 %v1994_v62, %v786_v15 }
 0x140   : > { %v767_v22 = vmul.f32 %v1996_v0, %v766_v17 }
 0x141   : > { %v791_v25 = vsel %vm790_vm11, %v1994_v62, %v787_v21 }
 0x142   : > { %v795_v26 = vmul.f32 %v791_v25, %v2315_v33  ;;  %v771_v27 = vsel %vm770_vm14, %v1996_v0, %v767_v22  ;;  %v1981_v33 = vld [vmem:[%s2580_s20] ss:$0 sm:$0xff] }
 0x143   : > { %v793_v29 = vmul.f32 %v771_v27, %v2318_v34 }
 0x144   : > { %v802_v31 = vmul.f32 %v1979_v19, %v795_v26 }
 0x145   : > { %v800_v24 = vmul.f32 %v1979_v19, %v793_v29 }
 0x146   : > { %v809_v35 = vadd.f32 %v1980_v23, %v802_v31 }
 0x147   : > { %v807_v37 = vadd.f32 %v1980_v23, %v800_v24 }
 0x148   : > { %v811_v38 = vpack.c.bf16 %v809_v35, %v808_v32 }
 0x149   : > { %v810_v39 = vpack.c.bf16 %v807_v37, %v806_v36 }
 0x14a   : > { %1833 = vmatmul.msk.bf16.vlgmr.msra.gmra.mxu1 %vm700_vm1, %v811_v38 }
 0x14b   : > { %1832 = vmatmul.msk.bf16.vlgmr.msra.gmra.mxu0 %vm700_vm1, %v810_v39 }
 0x1c7   : > { %v852_v40 = vpop.f32.mrf.mxu1 }
 0x1c8   : > { %v847_v34 = vpop.f32.mrf.mxu0  ;;  %v853_v41 = vadd.f32 %v1981_v33, %v852_v40 }
 0x1c9   : > { %v848_v42 = vadd.f32 %v1981_v33, %v847_v34 }
 0x1ca   : > { %v859_v43 = vmul.f32 0.25, %v853_v41  ;;  %v903_v11 = vpack.c.bf16 %v853_v41, %v853_v41 }
 0x1cb   : > { %v857_v44 = vmul.f32 0.25, %v848_v42  ;;  %v901_v56 = vpack.c.bf16 %v848_v42, %v848_v42 }
 0x1cc   : > { %v879_v51 = vpack.c.bf16 %v859_v43, %v859_v43  ;;  %v951_v13 = vunpack.c.l.b16 %v903_v11 }
 0x1cd   : > { %v877_v52 = vpack.c.bf16 %v857_v44, %v857_v44  ;;  %v918_v1 = vunpack.c.l.b16 %v901_v56 }
 0x1ce   : > { %v946_v61 = vunpack.c.l.b16 %v879_v51 }
 0x1cf   : > { %v854_v45 = vpop.f32.mrf.mxu1  ;;  %v913_v63 = vunpack.c.l.b16 %v877_v52 }
 0x1d0   : > { %v849_v46 = vpop.f32.mrf.mxu0  ;;  %v855_v47 = vadd.f32 %v1981_v33, %v854_v45 }
 0x1d1   : > { %v850_v48 = vadd.f32 %v1981_v33, %v849_v46 }
 0x1d2   : > { %v860_v49 = vmul.f32 0.25, %v855_v47  ;;  %v1954_v50 = vpack.i.bf16 %v855_v47, %v853_v41  ;;  %v904_v6 = vpack.c.bf16 %v855_v47, %v855_v47 }
 0x1d3   : > { %v858_v53 = vmul.f32 0.25, %v850_v48  ;;  %v902_v54 = vpack.c.bf16 %v850_v48, %v850_v48  ;;  %v1949_v55 = vpack.i.bf16 %v850_v48, %v848_v42 }
 0x1d4   : > { %1955 = vrot.lane.b32.xlu0 %v1954_v50, %s2094_s26  ;;  %v1964_v57 = vpack.i.bf16 %v860_v49, %v859_v43  ;;  %v880_v58 = vpack.c.bf16 %v860_v49, %v860_v49  ;;  %v952_v12 = vunpack.c.l.b16 %v904_v6 }
 0x1d5   : > { %v878_v59 = vpack.c.bf16 %v858_v53, %v858_v53  ;;  %1950 = vrot.lane.b32.xlu2 %v1949_v55, %s2094_s26  ;;  %v919_v60 = vunpack.c.l.b16 %v902_v54  ;;  %v1959_v10 = vpack.i.bf16 %v858_v53, %v857_v44 }
 0x1d6   : > { %v947_v62 = vunpack.c.l.b16 %v880_v58  ;;  %v2359_v14 = vpack.c.b16 %v952_v12, %v951_v13  ;;  %v909_v58 = vld [vmem:[%s2581_s30] sm:$0xff] }
 0x1d7   : > { %v914_v0 = vunpack.c.l.b16 %v878_v59  ;;  %v2355_v7 = vpack.c.b16 %v919_v60, %v918_v1  ;;  %v910_v1 = vld [vmem:[%s2582_s0 + $0x8] sm:$0xff] }
 0x1d8   : > { %v948_v2 = vpack.c.b16 %v947_v62, %v946_v61 }
 0x1d9   : > { %v915_v3 = vpack.c.b16 %v914_v0, %v913_v63 }
 0x1dc   : > { %921 = vrot.lane.b32.xlu0 %v2355_v7, %s2095_s18 }
 0x1dd   : > { %1960 = vrot.lane.b32.xlu2 %v1959_v10, %s2094_s26 }
 0x1e4   : > { %954 = vrot.lane.b32.xlu0 %v2359_v14, %s2095_s18 }
 0x22f   : > { %v1951_v15 = vpop.permute.xlu2 %1950 }
 0x230   : > { %v1953_v16 = vunpack.i.h.bf16 %v1951_v15  ;;  %v1952_v17 = vunpack.i.l.bf16 %v1951_v15 }
 0x232   : > { %v906_v19 = vpack.c.bf16 %v1953_v16, %v1953_v16  ;;  %v905_v20 = vpack.c.bf16 %v1952_v17, %v1952_v17 }
 0x234   : > { %v984_v21 = vunpack.c.l.b16 %v906_v19  ;;  %v983_v22 = vunpack.c.l.b16 %v905_v20 }
 0x236   : > { %v2362_v25 = vpack.c.b16 %v984_v21, %v983_v22 }
 0x237   : > { %v1961_v38 = vpop.permute.xlu2 %1960 }
 0x238   : > { %986 = vrot.lane.b32.xlu1 %v2362_v25, %s2095_s18  ;;  %v1963_v39 = vunpack.i.h.bf16 %v1961_v38  ;;  %v1962_v33 = vunpack.i.l.bf16 %v1961_v38 }
 0x23a   : > { %v882_v40 = vpack.c.bf16 %v1963_v39, %v1963_v39  ;;  %v881_v34 = vpack.c.bf16 %v1962_v33, %v1962_v33 }
 0x23c   : > { %v979_v45 = vunpack.c.l.b16 %v882_v40  ;;  %v978_v46 = vunpack.c.l.b16 %v881_v34 }
 0x23e   : > { %v980_v47 = vpack.c.b16 %v979_v45, %v978_v46 }
 0x240   : > { %1965 = vrot.lane.b32.xlu1 %v1964_v57, %s2094_s26 }
 0x246   : > { %v1956_v26 = vpop.permute.xlu0 %1955 }
 0x247   : > { %v1958_v27 = vunpack.i.h.bf16 %v1956_v26  ;;  %v1957_v23 = vunpack.i.l.bf16 %v1956_v26 }
 0x249   : > { %v908_v28 = vpack.c.bf16 %v1958_v27, %v1958_v27  ;;  %v907_v29 = vpack.c.bf16 %v1957_v23, %v1957_v23 }
 0x24b   : > { %v1016_v30 = vunpack.c.l.b16 %v908_v28  ;;  %v1015_v31 = vunpack.c.l.b16 %v907_v29 }
 0x24d   : > { %v2366_v24 = vpack.c.b16 %v1016_v30, %v1015_v31 }
 0x24e   : > { %v922_v32 = vpop.permute.xlu0 %921 }
 0x24f   : > { %1018 = vrot.lane.b32.xlu2 %v2366_v24, %s2095_s18  ;;  %v928_v35 = vsel %vm923_vm15, %v922_v32, 0  ;;  %s2585_s18 = scalar_lea.vmem %s2548_s9, %s2207_s21 }
 0x250   : > { %937 = vmatpush.bf16.xpose.msrb.mxu1 %v928_v35 }
 0x256   : > { %v955_v36 = vpop.permute.xlu0 %954 }
 0x257   : > { %1834 = vmatmul.msk.bf16.vlgmr.msrb.gmra.mxu1 %vm923_vm15, %v915_v3  ;;  %v960_v37 = vsel %vm923_vm15, %v955_v36, 0 }
 0x258   : > { %969 = vmatpush.bf16.xpose.msra.mxu2 %v960_v37 }
 0x25f   : > { %1835 = vmatmul.msk.bf16.vlgmr.msra.gmra.mxu2 %vm923_vm15, %v948_v2 }
 0x2a9   : > { %v1019_v41 = vpop.permute.xlu2 %1018 }
 0x2aa   : > { %v987_v42 = vpop.permute.xlu1 %986  ;;  %v1024_v43 = vsel %vm923_vm15, %v1019_v41, 0 }
 0x2ab   : > { %v992_v44 = vsel %vm923_vm15, %v987_v42, 0  ;;  %1033 = vmatpush.bf16.xpose.msra.mxu1 %v1024_v43 }
 0x2ac   : > { %1001 = vmatpush.bf16.xpose.msra.mxu3 %v992_v44 }
 0x2b2   : > { %v1966_v48 = vpop.permute.xlu1 %1965 }
 0x2b3   : > { %v1968_v49 = vunpack.i.h.bf16 %v1966_v48  ;;  %v1967_v50 = vunpack.i.l.bf16 %v1966_v48  ;;  %1836 = vmatmul.msk.bf16.vlgmr.msra.gmra.mxu3 %vm923_vm15, %v980_v47 }
 0x2b5   : > { %v884_v51 = vpack.c.bf16 %v1968_v49, %v1968_v49  ;;  %v883_v52 = vpack.c.bf16 %v1967_v50, %v1967_v50 }
 0x2b7   : > { %v1011_v53 = vunpack.c.l.b16 %v884_v51  ;;  %v1010_v54 = vunpack.c.l.b16 %v883_v52 }
 0x2b9   : > { %v1012_v55 = vpack.c.b16 %v1011_v53, %v1010_v54 }
 0x2bb   : > { %1837 = vmatmul.msk.bf16.vlgmr.msra.gmra.mxu1 %vm923_vm15, %v1012_v55 }
 0x2d4   : > { %v939_v56 = vpop.f32.mrf.mxu1 }
 0x2d5   : > { %v940_v17 = vadd.f32 %v939_v56, %v909_v58 }
 0x2d7   : > { %v1040_v20 = vsel %vm923_vm15, %v940_v17, -inf }
 0x2dc   : > { %v941_v57 = vpop.f32.mrf.mxu1 }
 0x2dd   : > { %v942_v3 = vadd.f32 %v941_v57, %v910_v1 }
 0x2df   : > { %v1043_v16 = vsel %vm923_vm15, %v942_v3, -inf }
 0x2e2   : > { %v971_v10 = vpop.f32.mrf.mxu2 }
 0x2e3   : > { %v972_v19 = vadd.f32 %v971_v10, %v909_v58 }
 0x2e5   : > { %v1046_v22 = vsel %vm923_vm15, %v972_v19, -inf }
 0x2ea   : > { %v973_v21 = vpop.f32.mrf.mxu2 }
 0x2eb   : > { %v2390_v26 = vadd.f32 %v973_v21, %v910_v1 }
 0x2ed   : > { %v1049_v27 = vsel %vm923_vm15, %v2390_v26, -inf }
 0x336   : > { %v1003_v59 = vpop.f32.mrf.mxu3 }
 0x337   : > { %v1004_v60 = vadd.f32 %v1003_v59, %v909_v58 }
 0x338   : > { %v1035_v61 = vpop.f32.mrf.mxu1 }
 0x339   : > { %v1036_v62 = vadd.f32 %v1035_v61, %v909_v58  ;;  %v1052_v63 = vsel %vm923_vm15, %v1004_v60, -inf }
 0x33a   : > { %1053 = vmax.xlane.f32.xlu2 %v1052_v63 }
 0x33b   : > { %v1058_v0 = vsel %vm923_vm15, %v1036_v62, -inf }
 0x33c   : > { %1059 = vmax.xlane.f32.xlu0 %v1058_v0 }
 0x33e   : > { %v1005_v2 = vpop.f32.mrf.mxu3 }
 0x33f   : > { %v1006_v6 = vadd.f32 %v1005_v2, %v910_v1 }
 0x340   : > { %v1037_v11 = vpop.f32.mrf.mxu1 }
 0x341   : > { %v1038_v12 = vadd.f32 %v1037_v11, %v910_v1  ;;  %v1055_v13 = vsel %vm923_vm15, %v1006_v6, -inf }
 0x342   : > { %1056 = vmax.xlane.f32.xlu1 %v1055_v13 }
 0x343   : > { %v1061_v15 = vsel %vm923_vm15, %v1038_v12, -inf }
 0x344   : > { %1062 = vmax.xlane.f32.xlu2 %v1061_v15  ;;  %1044 = vmax.xlane.f32.xlu0 %v1043_v16 }
 0x34a   : > { %1041 = vmax.xlane.f32.xlu1 %v1040_v20 }
 0x34c   : > { %1047 = vmax.xlane.f32.xlu2 %v1046_v22 }
 0x352   : > { %1050 = vmax.xlane.f32.xlu1 %v1049_v27 }
 0x36b   : > { %1191 = vrot.lane.b32.xlu1 %v2362_v25, %s2096_s6 }
 0x373   : > { %1141 = vrot.lane.b32.xlu1 %v2355_v7, %s2096_s6 }
 0x37b   : > { %1166 = vrot.lane.b32.xlu1 %v2359_v14, %s2096_s6 }
 0x3ad   : > { %v1054_v23 = vpop.xlane.xlu2 %1053 }
 0x3ae   : > { %v1068_v28 = vsub.f32 %v1004_v60, %v1054_v23 }
 0x3af   : > { %v1060_v29 = vpop.xlane.xlu0 %1059 }
 0x3b0   : > { %v1080_v30 = vmul.f32 1.442695, %v1068_v28  ;;  %v1070_v31 = vsub.f32 %v1036_v62, %v1060_v29 }
 0x3b2   : > { %1997 = vpow2.f32 %v1080_v30  ;;  %v1084_v32 = vmul.f32 1.442695, %v1070_v31 }
 0x3b4   : > { %1999 = vpow2.f32 %v1084_v32 }
 0x3b5   : > { %v1057_v35 = vpop.xlane.xlu1 %1056 }
 0x3b6   : > { %v1069_v36 = vsub.f32 %v1006_v6, %v1057_v35 }
 0x3b7   : > { %v1063_v37 = vpop.xlane.xlu2 %1062  ;;  %v1045_v45 = vpop.xlane.xlu0 %1044 }
 0x3b8   : > { %v1998_v38 = vpop.eup %1997  ;;  %v1082_v39 = vmul.f32 1.442695, %v1069_v36  ;;  %v1071_v25 = vsub.f32 %v1038_v12, %v1063_v37  ;;  %v1065_v47 = vsub.f32 %v942_v3, %v1045_v45 }
 0x3b9   : > { %v1100_v33 = vsel %vm923_vm15, %v1998_v38, 0.0 }
 0x3ba   : > { %2001 = vpow2.f32 %v1082_v39  ;;  %1101 = vadd.xlane.f32.xlu0 %v1100_v33  ;;  %v1086_v7 = vmul.f32 1.442695, %v1071_v25  ;;  %v2000_v40 = vpop.eup %1999  ;;  %v1074_v49 = vmul.f32 1.442695, %v1065_v47 }
 0x3bb   : > { %v1106_v42 = vsel %vm923_vm15, %v2000_v40, 0.0 }
 0x3bc   : > { %2003 = vpow2.f32 %v1086_v7 }
 0x3bd   : > { %v1042_v14 = vpop.xlane.xlu1 %1041 }
 0x3be   : > { %v1064_v41 = vsub.f32 %v940_v17, %v1042_v14 }
 0x3bf   : > { %v1048_v50 = vpop.xlane.xlu2 %1047 }
 0x3c0   : > { %v2002_v34 = vpop.eup %2001  ;;  %v1072_v44 = vmul.f32 1.442695, %v1064_v41  ;;  %v1066_v52 = vsub.f32 %v972_v19, %v1048_v50 }
 0x3c1   : > { %v1103_v43 = vsel %vm923_vm15, %v2002_v34, 0.0 }
 0x3c2   : > { %1107 = vadd.xlane.f32.xlu0 %v1106_v42  ;;  %1104 = vadd.xlane.f32.xlu2 %v1103_v43  ;;  %v2004_v46 = vpop.eup %2003  ;;  %2005 = vpow2.f32 %v1072_v44  ;;  %v1076_v54 = vmul.f32 1.442695, %v1066_v52 }
 0x3c3   : > { %v1109_v48 = vsel %vm923_vm15, %v2004_v46, 0.0  ;;  %2007 = vpow2.f32 %v1074_v49 }
 0x3c4   : > { %2009 = vpow2.f32 %v1076_v54 }
 0x3c5   : > { %v1051_v55 = vpop.xlane.xlu1 %1050 }
 0x3c6   : > { %v1067_v63 = vsub.f32 %v2390_v26, %v1051_v55 }
 0x3c8   : > { %v2006_v51 = vpop.eup %2005  ;;  %v1078_v0 = vmul.f32 1.442695, %v1067_v63 }
 0x3c9   : > { %v1088_v53 = vsel %vm923_vm15, %v2006_v51, 0.0  ;;  %v2008_v56 = vpop.eup %2007 }
 0x3ca   : > { %1110 = vadd.xlane.f32.xlu2 %v1109_v48  ;;  %v1091_v57 = vsel %vm923_vm15, %v2008_v56, 0.0  ;;  %v2408_v59 = vpop.eup %2009  ;;  %2011 = vpow2.f32 %v1078_v0 }
 0x3cb   : > { %v1094_v60 = vsel %vm923_vm15, %v2408_v59, 0.0 }
 0x3d2   : > { %1089 = vadd.xlane.f32.xlu2 %v1088_v53 }
 0x3d6   : > { %1216 = vrot.lane.b32.xlu0 %v2366_v24, %s2096_s6  ;;  %v2012_v24 = vpop.eup %2011 }
 0x3d7   : > { %v1097_v1 = vsel %vm923_vm15, %v2012_v24, 0.0 }
 0x3da   : > { %1092 = vadd.xlane.f32.xlu2 %v1091_v57 }
 0x3dd   : > { %v1192_v58 = vpop.permute.xlu1 %1191 }
 0x3de   : > { %1204 = vmatpush.bf16.msrb.mxu0 %v1192_v58 }
 0x3e2   : > { %1095 = vadd.xlane.f32.xlu2 %v1094_v60  ;;  %v1894_v60 = vld [vmem:[%s2233_s25] sm:$0xff] }
 0x3e5   : > { %v1142_v61 = vpop.permute.xlu1 %1141 }
 0x3e6   : > { %1154 = vmatpush.bf16.msrb.mxu2 %v1142_v61 }
 0x3ed   : > { %v1167_v62 = vpop.permute.xlu1 %1166 }
 0x3ee   : > { %1179 = vmatpush.bf16.msrb.mxu3 %v1167_v62 }
 0x400   : > { %1098 = vadd.xlane.f32.xlu0 %v1097_v1 }
 0x42d   : > { %v1102_v2 = vpop.xlane.xlu0 %1101 }
 0x42e   : > { %2013 = vrcp.f32 %v1102_v2 }
 0x434   : > { %v2014_v10 = vpop.eup %2013 }
 0x435   : > { %v1108_v3 = vpop.xlane.xlu0 %1107  ;;  %v1105_v6 = vpop.xlane.xlu2 %1104  ;;  %v1124_v11 = vmul.f32 %v2014_v10, %v1998_v38 }
 0x436   : > { %2015 = vrcp.f32 %v1105_v6 }
 0x437   : > { %2017 = vrcp.f32 %v1108_v3  ;;  %v1132_v16 = vpack.c.bf16 %v1124_v11, %v1124_v11 }
 0x439   : > { %v1188_v21 = vunpack.c.l.b16 %v1132_v16 }
 0x43c   : > { %v2016_v12 = vpop.eup %2015 }
 0x43d   : > { %v1111_v13 = vpop.xlane.xlu2 %1110  ;;  %v2018_v15 = vpop.eup %2017  ;;  %v1125_v17 = vmul.f32 %v2016_v12, %v2002_v34 }
 0x43e   : > { %2019 = vrcp.f32 %v1111_v13  ;;  %v1126_v20 = vmul.f32 %v2018_v15, %v2000_v40 }
 0x43f   : > { %v1133_v19 = vpack.c.bf16 %v1125_v17, %v1125_v17 }
 0x440   : > { %v1134_v23 = vpack.c.bf16 %v1126_v20, %v1126_v20 }
 0x441   : > { %v1189_v22 = vunpack.c.l.b16 %v1133_v19  ;;  %v1982_v19 = vld [vmem:[%s2583_s14] ss:$0 sm:$0xff] }
 0x442   : > { %v1213_v32 = vunpack.c.l.b16 %v1134_v23 }
 0x443   : > { %v1190_v27 = vpack.c.b16 %v1189_v22, %v1188_v21 }
 0x444   : > { %v2020_v26 = vpop.eup %2019 }
 0x445   : > { %v1127_v28 = vmul.f32 %v2020_v26, %v2004_v46  ;;  %v1090_v29 = vpop.xlane.xlu2 %1089  ;;  %1840 = vmatmul.msk.bf16.vlgmr.msrb.gmra.mxu0 %vm923_vm15, %v1190_v27 }
 0x446   : > { %2021 = vrcp.f32 %v1090_v29 }
 0x447   : > { %v1135_v30 = vpack.c.bf16 %v1127_v28, %v1127_v28 }
 0x448   : > { %v1217_v31 = vpop.permute.xlu0 %1216 }
 0x449   : > { %v1214_v35 = vunpack.c.l.b16 %v1135_v30  ;;  %1229 = vmatpush.bf16.msrb.mxu1 %v1217_v31 }
 0x44b   : > { %v1215_v36 = vpack.c.b16 %v1214_v35, %v1213_v32 }
 0x44c   : > { %v2022_v38 = vpop.eup %2021 }
 0x44d   : > { %1841 = vmatmul.msk.bf16.vlgmr.msrb.gmra.mxu1 %vm923_vm15, %v1215_v36  ;;  %v1093_v37 = vpop.xlane.xlu2 %1092  ;;  %v1120_v39 = vmul.f32 %v2022_v38, %v2006_v51 }
 0x44e   : > { %2023 = vrcp.f32 %v1093_v37 }
 0x44f   : > { %v1128_v33 = vpack.c.bf16 %v1120_v39, %v1120_v39 }
 0x451   : > { %v1138_v40 = vunpack.c.l.b16 %v1128_v33 }
 0x454   : > { %v2024_v25 = vpop.eup %2023 }
 0x455   : > { %v1121_v7 = vmul.f32 %v2024_v25, %v2008_v56  ;;  %v1096_v42 = vpop.xlane.xlu2 %1095 }
 0x456   : > { %2025 = vrcp.f32 %v1096_v42 }
 0x457   : > { %v1129_v14 = vpack.c.bf16 %v1121_v7, %v1121_v7 }
 0x459   : > { %v1139_v34 = vunpack.c.l.b16 %v1129_v14 }
 0x45b   : > { %v1140_v41 = vpack.c.b16 %v1139_v34, %v1138_v40 }
 0x45c   : > { %v2026_v44 = vpop.eup %2025 }
 0x45d   : > { %1838 = vmatmul.msk.bf16.vlgmr.msrb.gmra.mxu2 %vm923_vm15, %v1140_v41  ;;  %v1122_v45 = vmul.f32 %v2026_v44, %v2408_v59  ;;  %v1895_v59 = vld [vmem:[%s2233_s25 + $0x8] sm:$0xff] }
 0x45e   : > { %1290 = vmatpush.bf16.msra.mxu2 %v1895_v59 }
 0x45f   : > { %v1130_v47 = vpack.c.bf16 %v1122_v45, %v1122_v45 }
 0x461   : > { %v1163_v50 = vunpack.c.l.b16 %v1130_v47 }
 0x462   : > { %1291 = vmatpush.bf16.msra.mxu2 %v1894_v60 }
 0x473   : > { %v1099_v43 = vpop.xlane.xlu0 %1098 }
 0x474   : > { %2027 = vrcp.f32 %v1099_v43 }
 0x47a   : > { %v2028_v46 = vpop.eup %2027 }
 0x47b   : > { %v1123_v48 = vmul.f32 %v2028_v46, %v2012_v24 }
 0x47d   : > { %v1131_v49 = vpack.c.bf16 %v1123_v48, %v1123_v48 }
 0x47f   : > { %v1164_v51 = vunpack.c.l.b16 %v1131_v49 }
 0x481   : > { %v1165_v52 = vpack.c.b16 %v1164_v51, %v1163_v50  ;;  %v1897_v51 = vld [vmem:[%s2250_s29 + $0x8] sm:$0xff] }
 0x482   : > { %1445 = vmatpush.bf16.msra.mxu3 %v1897_v51  ;;  %v1901_v51 = vld [vmem:[%s2260_s27 + $0x18] sm:$0xff] }
 0x483   : > { %1839 = vmatmul.msk.bf16.vlgmr.msrb.gmra.mxu3 %vm923_vm15, %v1165_v52  ;;  %1591 = vmatpush.bf16.msra.mxu0 %v1901_v51 }
 0x4c2   : > { %v1206_v53 = vpop.f32.mrf.mxu0 }
 0x4ca   : > { %v1231_v54 = vpop.f32.mrf.mxu1  ;;  %v1208_v55 = vpop.f32.mrf.mxu0 }
 0x4cb   : > { %v1969_v56 = vpack.i.bf16 %v1208_v55, %v1206_v53 }
 0x4cd   : > { %1970 = vrot.lane.b32.xlu2 %v1969_v56, %s2097_s16 }
 0x4d2   : > { %v1233_v57 = vpop.f32.mrf.mxu1 }
 0x4d3   : > { %v1974_v58 = vpack.i.bf16 %v1233_v57, %v1231_v54  ;;  %v1896_v54 = vld [vmem:[%s2250_s29] sm:$0xff] }
 0x4d4   : > { %1446 = vmatpush.bf16.msra.mxu3 %v1896_v54 }
 0x4d5   : > { %1975 = vrot.lane.b32.xlu1 %v1974_v58, %s2097_s16 }
 0x4e0   : > { %v1156_v61 = vpop.f32.mrf.mxu2 }
 0x4e8   : > { %v1158_v24 = vpop.f32.mrf.mxu2 }
 0x506   : > { %v1181_v6 = vpop.f32.mrf.mxu3 }
 0x50e   : > { %v1183_v13 = vpop.f32.mrf.mxu3 }
 0x527   : > { %v1971_v62 = vpop.permute.xlu2 %1970 }
 0x528   : > { %v1973_v63 = vunpack.i.h.bf16 %v1971_v62  ;;  %v1972_v0 = vunpack.i.l.bf16 %v1971_v62 }
 0x52a   : > { %v1253_v1 = vsel %vm923_vm15, %v1158_v24, %v1973_v63  ;;  %v1252_v2 = vsel %vm923_vm15, %v1156_v61, %v1972_v0 }
 0x52b   : > { %v1256_v3 = vpack.c.bf16 %v1253_v1, %v1252_v2 }
 0x52d   : > { %1850 = vmatmul.msk.bf16.vlgmr.msra.gmra.mxu2 %vm700_vm1, %v1256_v3 }
 0x547   : > { %v1976_v10 = vpop.permute.xlu1 %1975 }
 0x548   : > { %v1978_v11 = vunpack.i.h.bf16 %v1976_v10  ;;  %v1977_v12 = vunpack.i.l.bf16 %v1976_v10 }
 0x54a   : > { %v1254_v15 = vsel %vm923_vm15, %v1181_v6, %v1977_v12  ;;  %v1255_v16 = vsel %vm923_vm15, %v1183_v13, %v1978_v11  ;;  %v1983_v11 = vld [vmem:[%s2584_s23] ss:$0 sm:$0xff] }
 0x54b   : > { %v1257_v17 = vpack.c.bf16 %v1255_v16, %v1254_v15  ;;  %v1984_v16 = vld [vmem:[%s2585_s18] ss:$0 sm:$0xff] }
 0x54d   : > { %1851 = vmatmul.msk.bf16.gmra.mxu2 %vm700_vm1, %v1257_v17 }
 0x5b0   : > { %v1293_v20 = vpop.f32.mrf.mxu2 }
 0x5b1   : > { %v1294_v21 = vadd.f32 %v1982_v19, %v1293_v20 }
 0x5b3   : > { %v2433_v22 = vadd.f32 %v1294_v21, %v2280_v5 }
 0x5b5   : > { %v1309_v26 = vsel %vm700_vm1, %v2433_v22, 0.0 }
 0x5b6   : > { %1310 = vadd.xlane.f32.xlu1 %v1309_v26 }
 0x5b8   : > { %v1295_v27 = vpop.f32.mrf.mxu2 }
 0x5b9   : > { %v1296_v23 = vadd.f32 %v1982_v19, %v1295_v27 }
 0x5bb   : > { %v2438_v28 = vadd.f32 %v1296_v23, %v2290_v9 }
 0x5bd   : > { %v1312_v29 = vsel %vm700_vm1, %v2438_v28, 0.0 }
 0x5be   : > { %1313 = vadd.xlane.f32.xlu2 %v1312_v29 }
 0x5d0   : > { %v1298_v30 = vpop.f32.mrf.mxu2 }
 0x5d1   : > { %v1299_v31 = vadd.f32 %v1982_v19, %v1298_v30 }
 0x5d3   : > { %v2443_v32 = vadd.f32 %v1299_v31, %v2277_v4 }
 0x5d5   : > { %v1315_v5 = vsel %vm700_vm1, %v2443_v32, 0.0 }
 0x5d6   : > { %1316 = vadd.xlane.f32.xlu0 %v1315_v5 }
 0x5d8   : > { %v1300_v35 = vpop.f32.mrf.mxu2 }
 0x5d9   : > { %v1301_v36 = vadd.f32 %v1982_v19, %v1300_v35 }
 0x5db   : > { %v2448_v37 = vadd.f32 %v1301_v36, %v2287_v8 }
 0x5dd   : > { %v1318_v9 = vsel %vm700_vm1, %v2448_v37, 0.0 }
 0x5de   : > { %1319 = vadd.xlane.f32.xlu0 %v1318_v9 }
 0x629   : > { %v1311_v38 = vpop.xlane.xlu1 %1310 }
 0x62a   : > { %v1321_v39 = vmul.f32 %v1311_v38, %v2296_v18 }
 0x62c   : > { %v1325_v25 = vsub.f32 %v2433_v22, %v1321_v39 }
 0x62e   : > { %v1329_v4 = vmul.f32 %v1325_v25, %v1325_v25 }
 0x630   : > { %v1333_v33 = vsel %vm700_vm1, %v1329_v4, 0.0 }
 0x631   : > { %v1314_v7 = vpop.xlane.xlu2 %1313  ;;  %1334 = vadd.xlane.f32.xlu0 %v1333_v33 }
 0x632   : > { %v1322_v14 = vmul.f32 %v1314_v7, %v2296_v18 }
 0x634   : > { %v1326_v40 = vsub.f32 %v2438_v28, %v1322_v14 }
 0x636   : > { %v1330_v8 = vmul.f32 %v1326_v40, %v1326_v40 }
 0x638   : > { %v1336_v34 = vsel %vm700_vm1, %v1330_v8, 0.0 }
 0x639   : > { %1337 = vadd.xlane.f32.xlu1 %v1336_v34 }
 0x649   : > { %v1317_v41 = vpop.xlane.xlu0 %1316 }
 0x64a   : > { %v1323_v42 = vmul.f32 %v1317_v41, %v2296_v18 }
 0x64c   : > { %v2460_v43 = vsub.f32 %v2443_v32, %v1323_v42 }
 0x64e   : > { %v1331_v44 = vmul.f32 %v2460_v43, %v2460_v43 }
 0x650   : > { %v1339_v45 = vsel %vm700_vm1, %v1331_v44, 0.0 }
 0x651   : > { %v1320_v46 = vpop.xlane.xlu0 %1319  ;;  %1340 = vadd.xlane.f32.xlu0 %v1339_v45 }
 0x652   : > { %v1324_v47 = vmul.f32 %v1320_v46, %v2296_v18 }
 0x654   : > { %v2467_v48 = vsub.f32 %v2448_v37, %v1324_v47 }
 0x656   : > { %v1332_v49 = vmul.f32 %v2467_v48, %v2467_v48 }
 0x658   : > { %v1342_v50 = vsel %vm700_vm1, %v1332_v49, 0.0 }
 0x659   : > { %1343 = vadd.xlane.f32.xlu1 %v1342_v50 }
 0x6a4   : > { %v1335_v52 = vpop.xlane.xlu0 %1334 }
 0x6a5   : > { %v1345_v53 = vmul.f32 %v1335_v52, %v2296_v18 }
 0x6a7   : > { %v1349_v55 = vadd.f32 1e-05, %v1345_v53  ;;  %v1900_v53 = vld [vmem:[%s2260_s27 + $0x10] sm:$0xff] }
 0x6a8   : > { %1592 = vmatpush.bf16.msra.mxu0 %v1900_v53 }
 0x6a9   : > { %2029 = vrsqrt.f32 %v1349_v55  ;;  %vm1359_vm2 = vweird.f32 %v1349_v55 }
 0x6ac   : > { %v1338_v56 = vpop.xlane.xlu1 %1337 }
 0x6ad   : > { %v1346_v57 = vmul.f32 %v1338_v56, %v2296_v18 }
 0x6af   : > { %v2030_v58 = vpop.eup %2029  ;;  %v1350_v59 = vadd.f32 1e-05, %v1346_v57 }
 0x6b0   : > { %v1354_v60 = vmul.f32 %v2030_v58, %v1349_v55  ;;  %vm1360_vm0 = vweird.f32 %v2030_v58  ;;  %v1899_v55 = vld [vmem:[%s2260_s27 + $0x8] sm:$0xff] }
 0x6b1   : > { %2031 = vrsqrt.f32 %v1350_v59  ;;  %vm1361_vm3 = vmor %vm1359_vm2, %vm1360_vm0  ;;  %vm1369_vm5 = vweird.f32 %v1350_v59  ;;  %1593 = vmatpush.bf16.msra.mxu0 %v1899_v55 }
 0x6b2   : > { %v1355_v61 = vmul.f32 %v2030_v58, %v1354_v60 }
 0x6b4   : > { %v1356_v62 = vmul.f32 0.5, %v1355_v61 }
 0x6b6   : > { %v1357_v63 = vsub.f32 1.5, %v1356_v62 }
 0x6b7   : > { %v2032_v0 = vpop.eup %2031 }
 0x6b8   : > { %v1358_v24 = vmul.f32 %v2030_v58, %v1357_v63  ;;  %v1364_v1 = vmul.f32 %v2032_v0, %v1350_v59  ;;  %vm1370_vm4 = vweird.f32 %v2032_v0 }
 0x6b9   : > { %vm1371_vm6 = vmor %vm1369_vm5, %vm1370_vm4 }
 0x6ba   : > { %v1365_v2 = vmul.f32 %v2032_v0, %v1364_v1  ;;  %v1362_v3 = vsel %vm1361_vm3, %v2030_v58, %v1358_v24  ;;  %v1898_v58 = vld [vmem:[%s2260_s27] sm:$0xff] }
 0x6bb   : > { %v1393_v12 = vmul.f32 %v1362_v3, %v1325_v25  ;;  %1594 = vmatpush.bf16.msra.mxu0 %v1898_v58 }
 0x6bc   : > { %v1366_v6 = vmul.f32 0.5, %v1365_v2 }
 0x6bd   : > { %v1400_v17 = vmul.f32 %v1983_v11, %v1393_v12 }
 0x6be   : > { %v1367_v10 = vsub.f32 1.5, %v1366_v6 }
 0x6bf   : > { %v1407_v23 = vadd.f32 %v1984_v16, %v1400_v17 }
 0x6c0   : > { %v1368_v13 = vmul.f32 %v2032_v0, %v1367_v10 }
 0x6c2   : > { %v1372_v15 = vsel %vm1371_vm6, %v2032_v0, %v1368_v13  ;;  %vm1580_vm6 = vcmask 523264  }
 0x6c3   : > { %v1394_v19 = vmul.f32 %v1372_v15, %v1326_v40 }
 0x6c4   : > { %v1341_v20 = vpop.xlane.xlu0 %1340 }
 0x6c5   : > { %v1347_v21 = vmul.f32 %v1341_v20, %v2296_v18  ;;  %v1401_v26 = vmul.f32 %v1983_v11, %v1394_v19 }
 0x6c7   : > { %v1351_v27 = vadd.f32 1e-05, %v1347_v21  ;;  %v1408_v29 = vadd.f32 %v1984_v16, %v1401_v26 }
 0x6c9   : > { %2033 = vrsqrt.f32 %v1351_v27  ;;  %v1411_v30 = vpack.c.bf16 %v1408_v29, %v1407_v23  ;;  %vm1379_vm8 = vweird.f32 %v1351_v27 }
 0x6cb   : > { %1860 = vmatmul.msk.bf16.vlgmr.msra.gmra.mxu3 %vm700_vm1, %v1411_v30 }
 0x6cc   : > { %v1344_v31 = vpop.xlane.xlu1 %1343 }
 0x6cd   : > { %v1348_v5 = vmul.f32 %v1344_v31, %v2296_v18 }
 0x6cf   : > { %v2034_v35 = vpop.eup %2033  ;;  %v1352_v36 = vadd.f32 1e-05, %v1348_v5 }
 0x6d0   : > { %v1374_v9 = vmul.f32 %v2034_v35, %v1351_v27  ;;  %vm1380_vm7 = vweird.f32 %v2034_v35 }
 0x6d1   : > { %2035 = vrsqrt.f32 %v1352_v36  ;;  %vm1381_vm9 = vmor %vm1379_vm8, %vm1380_vm7  ;;  %vm1389_vm11 = vweird.f32 %v1352_v36 }
 0x6d2   : > { %v1375_v38 = vmul.f32 %v2034_v35, %v1374_v9 }
 0x6d4   : > { %v1376_v39 = vmul.f32 0.5, %v1375_v38 }
 0x6d6   : > { %v1377_v25 = vsub.f32 1.5, %v1376_v39 }
 0x6d7   : > { %v2036_v4 = vpop.eup %2035 }
 0x6d8   : > { %v1378_v33 = vmul.f32 %v2034_v35, %v1377_v25  ;;  %v1384_v7 = vmul.f32 %v2036_v4, %v1352_v36  ;;  %vm1390_vm10 = vweird.f32 %v2036_v4 }
 0x6d9   : > { %vm1391_vm12 = vmor %vm1389_vm11, %vm1390_vm10 }
 0x6da   : > { %v1385_v14 = vmul.f32 %v2036_v4, %v1384_v7  ;;  %v1382_v40 = vsel %vm1381_vm9, %v2034_v35, %v1378_v33 }
 0x6db   : > { %v1395_v18 = vmul.f32 %v1382_v40, %v2460_v43  ;;  %v1985_v43 = vld [vmem:[%s664_s22] ss:$0 sm:$0xff] }
 0x6dc   : > { %v1386_v8 = vmul.f32 0.5, %v1385_v14 }
 0x6dd   : > { %v1402_v45 = vmul.f32 %v1983_v11, %v1395_v18 }
 0x6de   : > { %v1387_v34 = vsub.f32 1.5, %v1386_v8 }
 0x6df   : > { %v1409_v47 = vadd.f32 %v1984_v16, %v1402_v45 }
 0x6e0   : > { %v1388_v41 = vmul.f32 %v2036_v4, %v1387_v34 }
 0x6e2   : > { %v1392_v42 = vsel %vm1391_vm12, %v2036_v4, %v1388_v41 }
 0x6e3   : > { %v1396_v44 = vmul.f32 %v1392_v42, %v2467_v48 }
 0x6e5   : > { %v1403_v46 = vmul.f32 %v1983_v11, %v1396_v44 }
 0x6e7   : > { %v1410_v49 = vadd.f32 %v1984_v16, %v1403_v46 }
 0x6e9   : > { %v1412_v50 = vpack.c.bf16 %v1410_v49, %v1409_v47 }
 0x6eb   : > { %1861 = vmatmul.msk.bf16.gmra.mxu3 %vm700_vm1, %v1412_v50 }
 0x74e   : > { %v1448_v52 = vpop.f32.mrf.mxu3 }
 0x74f   : > { %v1449_v54 = vadd.f32 %v1985_v43, %v1448_v52 }
 0x751   : > { %v1862_v48 = vmul.f32 -1.702, %v1449_v54 }
 0x753   : > { %v1466_v56 = vmul.f32 1.442695, %v1862_v48 }
 0x755   : > { %2037 = vpow2.f32 %v1466_v56 }
 0x756   : > { %v1450_v57 = vpop.f32.mrf.mxu3 }
 0x757   : > { %v1451_v59 = vadd.f32 %v1985_v43, %v1450_v57 }
 0x759   : > { %v1863_v60 = vmul.f32 -1.702, %v1451_v59 }
 0x75b   : > { %v2038_v61 = vpop.eup %2037  ;;  %v1468_v62 = vmul.f32 1.442695, %v1863_v60 }
 0x75c   : > { %v1474_v63 = vadd.f32 1.0, %v2038_v61 }
 0x75d   : > { %2039 = vpow2.f32 %v1468_v62 }
 0x75e   : > { %2041 = vrcp.f32 %v1474_v63  ;;  %v1489_v15 = vand.u32 2147483648, %v1474_v63  ;;  %vm1483_vm14 = vweird.f32 %v1474_v63  ;;  %v1487_v17 = vand.u32 2147483647, %v1474_v63 }
 0x760   : > { %v1490_v29 = vor.u32 1.1754944e-38, %v1489_v15  ;;  %vm1488_vm2 = vcmp.eq.f32.partialorder %v1487_v17, 8.507059e+37 }
 0x763   : > { %v2040_v0 = vpop.eup %2039 }
 0x764   : > { %v2042_v24 = vpop.eup %2041  ;;  %v1475_v1 = vadd.f32 1.0, %v2040_v0  ;;  %v1986_v0 = vld [vmem:[%s672_s15] ss:$0 sm:$0xff] }
 0x765   : > { %v1479_v2 = vmul.f32 %v2042_v24, %v1474_v63  ;;  %vm1484_vm13 = vweird.f32 %v2042_v24 }
 0x766   : > { %2043 = vrcp.f32 %v1475_v1  ;;  %vm1485_vm15 = vmor %vm1483_vm14, %vm1484_vm13  ;;  %v1504_v20 = vand.u32 2147483648, %v1475_v1  ;;  %v1502_v23 = vand.u32 2147483647, %v1475_v1  ;;  %vm1498_vm3 = vweird.f32 %v1475_v1 }
 0x767   : > { %v1480_v3 = vsub.f32 1.0, %v1479_v2 }
 0x768   : > { %v1505_v35 = vor.u32 1.1754944e-38, %v1504_v20  ;;  %vm1503_vm5 = vcmp.eq.f32.partialorder %v1502_v23, 8.507059e+37 }
 0x769   : > { %v1481_v6 = vmul.f32 %v2042_v24, %v1480_v3 }
 0x76b   : > { %v1482_v11 = vadd.f32 %v2042_v24, %v1481_v6 }
 0x76c   : > { %v2044_v10 = vpop.eup %2043 }
 0x76d   : > { %v1494_v12 = vmul.f32 %v2044_v10, %v1475_v1  ;;  %v1486_v26 = vsel %vm1485_vm15, %v2042_v24, %v1482_v11  ;;  %vm1499_vm0 = vweird.f32 %v2044_v10 }
 0x76e   : > { %v1453_v13 = vpop.f32.mrf.mxu3  ;;  %v1491_v5 = vsel %vm1488_vm2, %v1490_v29, %v1486_v26  ;;  %vm1500_vm4 = vmor %vm1498_vm3, %vm1499_vm0 }
 0x76f   : > { %v2501_v16 = vadd.f32 %v1985_v43, %v1453_v13  ;;  %v1495_v19 = vsub.f32 1.0, %v1494_v12  ;;  %v1538_v25 = vmul.f32 %v1491_v5, %v1449_v54 }
 0x771   : > { %v1864_v21 = vmul.f32 -1.702, %v2501_v16  ;;  %v1496_v27 = vmul.f32 %v2044_v10, %v1495_v19 }
 0x773   : > { %v1470_v30 = vmul.f32 1.442695, %v1864_v21  ;;  %v1497_v31 = vadd.f32 %v2044_v10, %v1496_v27 }
 0x775   : > { %2045 = vpow2.f32 %v1470_v30  ;;  %v1501_v36 = vsel %vm1500_vm4, %v2044_v10, %v1497_v31 }
 0x776   : > { %v1455_v9 = vpop.f32.mrf.mxu3  ;;  %v1506_v38 = vsel %vm1503_vm5, %v1505_v35, %v1501_v36 }
 0x777   : > { %v1456_v39 = vadd.f32 %v1985_v43, %v1455_v9  ;;  %v1539_v4 = vmul.f32 %v1506_v38, %v1451_v59 }
 0x779   : > { %v1865_v33 = vmul.f32 -1.702, %v1456_v39  ;;  %v1542_v7 = vpack.c.bf16 %v1539_v4, %v1538_v25 }
 0x77b   : > { %v2046_v14 = vpop.eup %2045  ;;  %v1472_v40 = vmul.f32 1.442695, %v1865_v33  ;;  %1882 = vmatmul.msk.bf16.vlgmr.msra.gmra.mxu0 %vm1580_vm6, %v1542_v7 }
 0x77c   : > { %v1476_v8 = vadd.f32 1.0, %v2046_v14 }
 0x77d   : > { %2047 = vpow2.f32 %v1472_v40 }
 0x77e   : > { %2049 = vrcp.f32 %v1476_v8  ;;  %v1519_v50 = vand.u32 2147483648, %v1476_v8  ;;  %vm1513_vm8 = vweird.f32 %v1476_v8  ;;  %v1517_v51 = vand.u32 2147483647, %v1476_v8 }
 0x780   : > { %v1520_v55 = vor.u32 1.1754944e-38, %v1519_v50  ;;  %vm1518_vm11 = vcmp.eq.f32.partialorder %v1517_v51, 8.507059e+37 }
 0x783   : > { %v2048_v34 = vpop.eup %2047 }
 0x784   : > { %v2050_v18 = vpop.eup %2049  ;;  %v1477_v41 = vadd.f32 1.0, %v2048_v34 }
 0x785   : > { %v1509_v42 = vmul.f32 %v2050_v18, %v1476_v8  ;;  %vm1514_vm7 = vweird.f32 %v2050_v18 }
 0x786   : > { %2051 = vrcp.f32 %v1477_v41  ;;  %vm1515_vm9 = vmor %vm1513_vm8, %vm1514_vm7  ;;  %v1534_v52 = vand.u32 2147483648, %v1477_v41  ;;  %v1532_v48 = vand.u32 2147483647, %v1477_v41  ;;  %vm1528_vm12 = vweird.f32 %v1477_v41 }
 0x787   : > { %v1510_v44 = vsub.f32 1.0, %v1509_v42 }
 0x788   : > { %v1535_v58 = vor.u32 1.1754944e-38, %v1534_v52  ;;  %vm1533_vm14 = vcmp.eq.f32.partialorder %v1532_v48, 8.507059e+37 }
 0x789   : > { %v1511_v45 = vmul.f32 %v2050_v18, %v1510_v44 }
 0x78b   : > { %v1512_v47 = vadd.f32 %v2050_v18, %v1511_v45 }
 0x78c   : > { %v2052_v46 = vpop.eup %2051 }
 0x78d   : > { %v1524_v49 = vmul.f32 %v2052_v46, %v1477_v41  ;;  %v1516_v53 = vsel %vm1515_vm9, %v2050_v18, %v1512_v47  ;;  %vm1529_vm10 = vweird.f32 %v2052_v46 }
 0x78e   : > { %v1521_v57 = vsel %vm1518_vm11, %v1520_v55, %v1516_v53  ;;  %vm1530_vm13 = vmor %vm1528_vm12, %vm1529_vm10 }
 0x78f   : > { %v1525_v43 = vsub.f32 1.0, %v1524_v49  ;;  %v1540_v61 = vmul.f32 %v1521_v57, %v2501_v16 }
 0x791   : > { %v1526_v54 = vmul.f32 %v2052_v46, %v1525_v43 }
 0x793   : > { %v1527_v56 = vadd.f32 %v2052_v46, %v1526_v54 }
 0x795   : > { %v1531_v59 = vsel %vm1530_vm13, %v2052_v46, %v1527_v56 }
 0x796   : > { %v1536_v60 = vsel %vm1533_vm14, %v1535_v58, %v1531_v59 }
 0x797   : > { %v1541_v62 = vmul.f32 %v1536_v60, %v1456_v39 }
 0x799   : > { %v1543_v63 = vpack.c.bf16 %v1541_v62, %v1540_v61 }
 0x79b   : > { %1883 = vmatmul.msk.bf16.gmra.mxu0 %vm1580_vm6, %v1543_v63 }
 0x7f8   : > { %v1596_v24 = vpop.f32.mrf.mxu0 }
 0x7f9   : > { %v1597_v1 = vadd.f32 %v1986_v0, %v1596_v24 }
 0x7fb   : > { %v1606_v2 = vadd.f32 %v1597_v1, %v2433_v22 }
 0x7fd   : > { %1610 = vst.msk [vmem:[%s2269_s3] sm:$0xff] %vm700_vm1, %v1606_v2 }
 0x800   : > { %v1598_v3 = vpop.f32.mrf.mxu0 }
 0x801   : > { %v1599_v6 = vadd.f32 %v1986_v0, %v1598_v3 }
 0x803   : > { %v1607_v10 = vadd.f32 %v1599_v6, %v2438_v28 }
 0x805   : > { %1611 = vst.msk [vmem:[%s2269_s3 + $0x8] sm:$0xff] %vm700_vm1, %v1607_v10 }
 0x818   : > { %v1601_v11 = vpop.f32.mrf.mxu0 }
 0x819   : > { %v1602_v12 = vadd.f32 %v1986_v0, %v1601_v11 }
 0x81b   : > { %v1608_v13 = vadd.f32 %v1602_v12, %v2443_v32 }
 0x81d   : > { %1612 = vst.msk [vmem:[%s2269_s3 + $0x10] sm:$0xff] %vm700_vm1, %v1608_v13 }
 0x820   : > { %v1603_v15 = vpop.f32.mrf.mxu0 }
 0x821   : > { %v1604_v16 = vadd.f32 %v1986_v0, %v1603_v15 }
 0x823   : > { %v1609_v17 = vadd.f32 %v1604_v16, %v2448_v37 }
 0x825   : > { %1613 = vst.msk [vmem:[%s2269_s3 + $0x18] sm:$0xff] %vm700_vm1, %v1609_v17 }
 0x826 PF: > { %s2586_s21 = sld [smem:[#allocation5_spill]] }
 0x827   : > { %s2587_s29 = sld [smem:[#allocation3_spill]] }
 0x828   : > { %s2588_s30 = sld [smem:[#allocation4_spill]] }
 0x829   : > { %s2589_s15 = sld [smem:[#allocation6_spill]] }
 0x82a   : > { %s2590_s16 = sld [smem:[#allocation7_spill]] }
 0x82c   : > { %s24_s17 = sadd.s32 1, %s2586_s21  }
 0x82d   : > { %p21_p8 = scmp.ge.s32.totalorder %s24_s17, 6  }
 0x82f   :  { %23 = sbr.rel (!%p21_p8) target bundleno = 7 (0x7), region = 146 }

</bundles_post_ra>
